<compile_context>
chip_gen: v7x
topology: tpu7x:2x2x1
jax: 0.10.0
libtpu: 0.0.40
codegen_flags: <defaults>
</compile_context>

<pallas_src>
import jax
import jax.numpy as jnp
from jax.experimental import pallas as pl
from jax.experimental.pallas import tpu as pltpu


def _round_up(n, m):
    return ((n + m - 1) // m) * m


def qnetwork_kernel(x_ref, w1_ref, w2_ref, w3_ref, w4_ref, b_ref, o_ref):
    """One batch tile of the 4-layer MLP.

    x_ref : (TM, IN_PAD)    f32  activation tile
    w*_ref: (K, N)          bf16 weights (VMEM-resident, constant index_map)
    b_ref : (4, MAX_WIDTH)  f32  packed biases (row i = bias of layer i+1)
    o_ref : (TM, OUT_PAD)   f32  output tile (lane-dense, padded action dim)
    """
    f32 = jnp.float32
    bf16 = jnp.bfloat16

    # fc1 + relu
    h = jnp.dot(x_ref[...].astype(bf16), w1_ref[...], preferred_element_type=f32)
    h = jnp.maximum(h + b_ref[0:1, : h.shape[-1]], 0.0)
    # fc2 + relu
    h = jnp.dot(h.astype(bf16), w2_ref[...], preferred_element_type=f32)
    h = jnp.maximum(h + b_ref[1:2, : h.shape[-1]], 0.0)
    # fc3 + relu
    h = jnp.dot(h.astype(bf16), w3_ref[...], preferred_element_type=f32)
    h = jnp.maximum(h + b_ref[2:3, : h.shape[-1]], 0.0)
    # fc4 (no activation), write padded (lane-dense) output
    out = jnp.dot(h.astype(bf16), w4_ref[...], preferred_element_type=f32)
    o_ref[...] = out + b_ref[3:4, : out.shape[-1]]


def qnetwork_forward(x, params, action_size, *, tm=256):
    """x: (batch, state_size) f32. Returns (batch, action_size) f32."""
    B, S = x.shape
    w1, w2, w3, w4 = params["w1"], params["w2"], params["w3"], params["w4"]
    biases = params["biases"]
    in_pad = w1.shape[0]
    out_pad = w4.shape[1]

    # Pad batch to a multiple of the batch tile and the state dim to the
    # (lane-dense) padded K of the first matmul. Zero rows/cols are harmless.
    b_pad = pl.cdiv(B, tm) * tm
    x = jnp.pad(x, ((0, b_pad - B), (0, in_pad - S)))

    const = lambda i: (0, 0)
    out = pl.pallas_call(
        qnetwork_kernel,
        out_shape=jax.ShapeDtypeStruct((b_pad, out_pad), jnp.float32),
        grid=(b_pad // tm,),
        in_specs=[
            pl.BlockSpec((tm, in_pad), lambda i: (i, 0)),   # activations: tiled
            pl.BlockSpec(w1.shape, const),                  # weights: resident
            pl.BlockSpec(w2.shape, const),
            pl.BlockSpec(w3.shape, const),
            pl.BlockSpec(w4.shape, const),
            pl.BlockSpec(biases.shape, const),              # packed biases
        ],
        out_specs=pl.BlockSpec((tm, out_pad), lambda i: (i, 0)),
        compiler_params=pltpu.CompilerParams(
            dimension_semantics=("parallel",),              # 2 TCs on v7x
            vmem_limit_bytes=32 * 1024 * 1024,              # safe on v5e/v6e/v7x
        ),
    )(x, w1, w2, w3, w4, biases)

    return out[:B, :action_size]


def init_qnetwork_params(key, state_size, action_size,
                         fc1_units=256, fc2_units=256, fc3_units=256):
    """Deterministic init mirroring PyTorch nn.Linear default:
    U(-1/sqrt(fan_in), 1/sqrt(fan_in)) for weights and biases.

    Weights stored as (in_features, out_features) in bfloat16; the first
    layer's input dim is zero-padded to a multiple of 128 and the last
    layer's output dim is zero-padded to a multiple of 128 (lane-dense).
    Biases are packed into one (4, max_width) float32 array.
    """
    in_pad = _round_up(state_size, 128)
    out_pad = _round_up(action_size, 128)
    dims = [(state_size, fc1_units),
            (fc1_units, fc2_units),
            (fc2_units, fc3_units),
            (fc3_units, action_size)]
    max_width = max(fc1_units, fc2_units, fc3_units, out_pad)

    params = {}
    biases = jnp.zeros((4, max_width), jnp.float32)
    for i, (fan_in, fan_out) in enumerate(dims, start=1):
        key, kw, kb = jax.random.split(key, 3)
        bound = 1.0 / (fan_in ** 0.5)
        w = jax.random.uniform(kw, (fan_in, fan_out), jnp.float32, -bound, bound)
        b = jax.random.uniform(kb, (fan_out,), jnp.float32, -bound, bound)
        if i == 1:  # pad K (state dim) with zero rows -> identical math
            w = jnp.pad(w, ((0, in_pad - fan_in), (0, 0)))
        if i == 4:  # pad N (action dim) with zero cols -> lane-dense output
            w = jnp.pad(w, ((0, 0), (0, out_pad - fan_out)))
            b = jnp.pad(b, (0, out_pad - fan_out))
        params[f"w{i}"] = w.astype(jnp.bfloat16)
        biases = biases.at[i - 1, : b.shape[0]].set(b)
    params["biases"] = biases
    return params


def qnetwork_reference(x, params, action_size):
    """Plain-JAX reference using the same bf16-weight / f32-accumulate recipe."""
    bf16, f32 = jnp.bfloat16, jnp.float32
    b = params["biases"]
    in_pad = params["w1"].shape[0]
    h = jnp.pad(x, ((0, 0), (0, in_pad - x.shape[1])))
    for i in range(1, 5):
        w = params[f"w{i}"]
        h = jnp.dot(h.astype(bf16), w, preferred_element_type=f32) + b[i - 1, : w.shape[1]]
        if i < 4:
            h = jnp.maximum(h, 0.0)
    return h[:, :action_size]


if __name__ == "__main__":
    state_size = 2    # as documented in the module docstring
    action_size = 3

    key = jax.random.PRNGKey(0)
    key, kx1, kx2 = jax.random.split(key, 3)
    params = init_qnetwork_params(key, state_size, action_size)

    # Small online-inference batch (padded internally to one 256-row tile).
    x_small = jax.random.normal(kx1, (8, state_size), jnp.float32)
    out_small = jax.block_until_ready(qnetwork_forward(x_small, params, action_size))
    ref_small = qnetwork_reference(x_small, params, action_size)
    assert out_small.shape == (8, action_size)
    assert jnp.allclose(out_small, ref_small, atol=1e-2, rtol=1e-2), "mismatch (small batch)"

    # Larger batch exercising a multi-step batch grid (2 tiles of 256 rows).
    x_big = jax.random.normal(kx2, (512, state_size), jnp.float32)
    out_big = jax.block_until_ready(qnetwork_forward(x_big, params, action_size))
    ref_big = qnetwork_reference(x_big, params, action_size)
    assert out_big.shape == (512, action_size)
    assert jnp.allclose(out_big, ref_big, atol=1e-2, rtol=1e-2), "mismatch (large batch)"

    print("KERNEL_OK")
</pallas_src>

<mosaic_0001>
module attributes {stable_mosaic.version = 11 : i64} {
  func.func @qnetwork_kernel(%arg0: i32, %arg1: memref<256x128xf32, #tpu.memory_space<vmem>>, %arg2: memref<128x256xbf16, #tpu.memory_space<vmem>>, %arg3: memref<256x256xbf16, #tpu.memory_space<vmem>>, %arg4: memref<256x256xbf16, #tpu.memory_space<vmem>>, %arg5: memref<256x128xbf16, #tpu.memory_space<vmem>>, %arg6: memref<4x256xf32, #tpu.memory_space<vmem>>, %arg7: memref<256x128xf32, #tpu.memory_space<vmem>>) attributes {dimension_semantics = [#tpu.dimension_semantics<parallel>], iteration_bounds = array<i64: 1>, scalar_prefetch = 0 : i64, scratch_operands = 0 : i64, tpu.core_type = #tpu.core_type<tc>, window_params = [{transform_indices = @transform_0, window_bounds = array<i64: 256, 128>}, {pipeline_mode = #tpu.pipeline_mode<synchronous>, transform_indices = @transform_1, window_bounds = array<i64: 128, 256>}, {pipeline_mode = #tpu.pipeline_mode<synchronous>, transform_indices = @transform_2, window_bounds = array<i64: 256, 256>}, {pipeline_mode = #tpu.pipeline_mode<synchronous>, transform_indices = @transform_3, window_bounds = array<i64: 256, 256>}, {pipeline_mode = #tpu.pipeline_mode<synchronous>, transform_indices = @transform_4, window_bounds = array<i64: 256, 128>}, {pipeline_mode = #tpu.pipeline_mode<synchronous>, transform_indices = @transform_5, window_bounds = array<i64: 4, 256>}, {transform_indices = @transform_6, window_bounds = array<i64: 256, 128>}]} {
    %c0 = arith.constant 0 : index
    %c0_0 = arith.constant 0 : index
    %0 = vector.load %arg1[%c0, %c0_0] : memref<256x128xf32, #tpu.memory_space<vmem>>, vector<256x128xf32>
    %1 = arith.truncf %0 : vector<256x128xf32> to vector<256x128xbf16>
    %c0_1 = arith.constant 0 : index
    %c0_2 = arith.constant 0 : index
    %2 = vector.load %arg2[%c0_1, %c0_2] : memref<128x256xbf16, #tpu.memory_space<vmem>>, vector<128x256xbf16>
    %cst = arith.constant dense<0.000000e+00> : vector<256x256xf32>
    %3 = tpu.matmul %1, %2, %cst {dimension_numbers = #tpu.dot_dimension_numbers<[1], [0], [0], [1], [0, 0, 1, 1], [], []>} : vector<256x128xbf16>, vector<128x256xbf16>, vector<256x256xf32> -> vector<256x256xf32>
    %c0_3 = arith.constant 0 : index
    %c0_4 = arith.constant 0 : index
    %4 = vector.load %arg6[%c0_3, %c0_4] : memref<4x256xf32, #tpu.memory_space<vmem>>, vector<1x256xf32>
    %5 = vector.broadcast %4 : vector<1x256xf32> to vector<256x256xf32>
    %6 = arith.addf %3, %5 : vector<256x256xf32>
    %cst_5 = arith.constant 0.000000e+00 : f32
    %7 = vector.broadcast %cst_5 : f32 to vector<256x256xf32>
    %8 = arith.maximumf %6, %7 : vector<256x256xf32>
    %9 = arith.truncf %8 : vector<256x256xf32> to vector<256x256xbf16>
    %c0_6 = arith.constant 0 : index
    %c0_7 = arith.constant 0 : index
    %10 = vector.load %arg3[%c0_6, %c0_7] : memref<256x256xbf16, #tpu.memory_space<vmem>>, vector<256x256xbf16>
    %cst_8 = arith.constant dense<0.000000e+00> : vector<256x256xf32>
    %11 = tpu.matmul %9, %10, %cst_8 {dimension_numbers = #tpu.dot_dimension_numbers<[1], [0], [0], [1], [0, 0, 1, 1], [], []>} : vector<256x256xbf16>, vector<256x256xbf16>, vector<256x256xf32> -> vector<256x256xf32>
    %c1 = arith.constant 1 : index
    %c0_9 = arith.constant 0 : index
    %12 = vector.load %arg6[%c1, %c0_9] : memref<4x256xf32, #tpu.memory_space<vmem>>, vector<1x256xf32>
    %13 = vector.broadcast %12 : vector<1x256xf32> to vector<256x256xf32>
    %14 = arith.addf %11, %13 : vector<256x256xf32>
    %cst_10 = arith.constant 0.000000e+00 : f32
    %15 = vector.broadcast %cst_10 : f32 to vector<256x256xf32>
    %16 = arith.maximumf %14, %15 : vector<256x256xf32>
    %17 = arith.truncf %16 : vector<256x256xf32> to vector<256x256xbf16>
    %c0_11 = arith.constant 0 : index
    %c0_12 = arith.constant 0 : index
    %18 = vector.load %arg4[%c0_11, %c0_12] : memref<256x256xbf16, #tpu.memory_space<vmem>>, vector<256x256xbf16>
    %cst_13 = arith.constant dense<0.000000e+00> : vector<256x256xf32>
    %19 = tpu.matmul %17, %18, %cst_13 {dimension_numbers = #tpu.dot_dimension_numbers<[1], [0], [0], [1], [0, 0, 1, 1], [], []>} : vector<256x256xbf16>, vector<256x256xbf16>, vector<256x256xf32> -> vector<256x256xf32>
    %c2 = arith.constant 2 : index
    %c0_14 = arith.constant 0 : index
    %20 = vector.load %arg6[%c2, %c0_14] : memref<4x256xf32, #tpu.memory_space<vmem>>, vector<1x256xf32>
    %21 = vector.broadcast %20 : vector<1x256xf32> to vector<256x256xf32>
    %22 = arith.addf %19, %21 : vector<256x256xf32>
    %cst_15 = arith.constant 0.000000e+00 : f32
    %23 = vector.broadcast %cst_15 : f32 to vector<256x256xf32>
    %24 = arith.maximumf %22, %23 : vector<256x256xf32>
    %25 = arith.truncf %24 : vector<256x256xf32> to vector<256x256xbf16>
    %c0_16 = arith.constant 0 : index
    %c0_17 = arith.constant 0 : index
    %26 = vector.load %arg5[%c0_16, %c0_17] : memref<256x128xbf16, #tpu.memory_space<vmem>>, vector<256x128xbf16>
    %cst_18 = arith.constant dense<0.000000e+00> : vector<256x128xf32>
    %27 = tpu.matmul %25, %26, %cst_18 {dimension_numbers = #tpu.dot_dimension_numbers<[1], [0], [0], [1], [0, 0, 1, 1], [], []>} : vector<256x256xbf16>, vector<256x128xbf16>, vector<256x128xf32> -> vector<256x128xf32>
    %c3 = arith.constant 3 : index
    %c0_19 = arith.constant 0 : index
    %28 = vector.load %arg6[%c3, %c0_19] : memref<4x256xf32, #tpu.memory_space<vmem>>, vector<1x128xf32>
    %29 = vector.broadcast %28 : vector<1x128xf32> to vector<256x128xf32>
    %30 = arith.addf %27, %29 : vector<256x128xf32>
    %c0_20 = arith.constant 0 : index
    %c0_21 = arith.constant 0 : index
    %31 = vector.load %arg7[%c0_20, %c0_21] : memref<256x128xf32, #tpu.memory_space<vmem>>, vector<256x128xf32>
    tpu.vector_store %arg7[%c0_20, %c0_21], %30 {strides = array<i32>} : memref<256x128xf32, #tpu.memory_space<vmem>>, vector<256x128xf32>,
    return
  }
  func.func @transform_0(%arg0: i32) -> (i32, i32) {
    %c0_i32 = arith.constant 0 : i32
    %c0_i32_0 = arith.constant 0 : i32
    return %arg0, %c0_i32 : i32, i32
  }
  func.func @transform_1(%arg0: i32) -> (i32, i32) {
    %c0_i32 = arith.constant 0 : i32
    %c0_i32_0 = arith.constant 0 : i32
    %c0_i32_1 = arith.constant 0 : i32
    return %c0_i32, %c0_i32_0 : i32, i32
  }
  func.func @transform_2(%arg0: i32) -> (i32, i32) {
    %c0_i32 = arith.constant 0 : i32
    %c0_i32_0 = arith.constant 0 : i32
    %c0_i32_1 = arith.constant 0 : i32
    return %c0_i32, %c0_i32_0 : i32, i32
  }
  func.func @transform_3(%arg0: i32) -> (i32, i32) {
    %c0_i32 = arith.constant 0 : i32
    %c0_i32_0 = arith.constant 0 : i32
    %c0_i32_1 = arith.constant 0 : i32
    return %c0_i32, %c0_i32_0 : i32, i32
  }
  func.func @transform_4(%arg0: i32) -> (i32, i32) {
    %c0_i32 = arith.constant 0 : i32
    %c0_i32_0 = arith.constant 0 : i32
    %c0_i32_1 = arith.constant 0 : i32
    return %c0_i32, %c0_i32_0 : i32, i32
  }
  func.func @transform_5(%arg0: i32) -> (i32, i32) {
    %c0_i32 = arith.constant 0 : i32
    %c0_i32_0 = arith.constant 0 : i32
    %c0_i32_1 = arith.constant 0 : i32
    return %c0_i32, %c0_i32_0 : i32, i32
  }
  func.func @transform_6(%arg0: i32) -> (i32, i32) {
    %c0_i32 = arith.constant 0 : i32
    %c0_i32_0 = arith.constant 0 : i32
    return %arg0, %c0_i32 : i32, i32
  }
}

</mosaic_0001>

<bundles_post_ra>
// kernel: tpu_custom_call.1
= control target key start
LH: loop header
LB: loop body
LE: loop exit
PB: predicated region body
PF: predicated region fallthrough
CT: control target
= control target key end

     0   :  { %11 = vsyncpa [#allocation3], 0  ;;  %s2808_s0 = inlined_call_operand.hbm [shape: f32[256,128], index: 0, kind: input, shape index: {}]   ;;  %s2809_s1 = inlined_call_operand.hbm [shape: bf16[128,256], index: 1, kind: input, shape index: {}]   ;;  %s2810_s2 = inlined_call_operand.hbm [shape: bf16[256,256], index: 2, kind: input, shape index: {}]   ;;  %s2811_s3 = inlined_call_operand.hbm [shape: bf16[256,256], index: 3, kind: input, shape index: {}]   ;;  %s2812_s4 = inlined_call_operand.hbm [shape: bf16[256,128], index: 4, kind: input, shape index: {}]   ;;  %s2813_s5 = inlined_call_operand.vmem [shape: f32[4,256], index: 5, kind: input, shape index: {}]   ;;  %s2814_s6 = inlined_call_operand.hbm [shape: f32[256,128], index: 6, kind: output, shape index: {}]  }
   0x1   :  { %12 = vsyncpa [#allocation6], 0 }
   0x2   :  { %13 = vsyncpa [#allocation9], 0 }
   0x3   :  { %14 = vsyncpa [#allocation4], 0  ;;  %s2385_s21 = smov [#allocation5]   ;;  %s2386_s23 = smov [#allocation8]  }
   0x4   :  { %s32_s22 = sshll.u32 %s2385_s21, 4  ;;  %s56_s24 = sshll.u32 %s2386_s23, 4  ;;  %s33_s22 = int_to_ptr.vmem [resolvable:$true] %s32_s22  ;;  %s2431_s24 = int_to_ptr.vmem [resolvable:$true] %s56_s24 }
   0x5   :  { %s2245_s27 = scalar_lea.hbm %s2809_s1, 2048 }
   0x6   :  { %p2246_p0 = scmp.ne.s32.totalorder %s2809_s1, %s2245_s27  ;;  %p2249_p1 = scmp.lt.u32.totalorder %s2245_s27, %s2809_s1 }
   0x8   :  { %p2251_p2 = pnand %p2249_p1, %p2246_p0 }
   0xa   :  { %2254 = shalt.err (!%p2251_p2)
}
   0xb   :  { %s2255_s8 = scalar_lea.vmem %s33_s22, 2048  ;;  %p2260_p4 = scmp.lt.s32.totalorder %s33_s22, %s33_s22 }
   0xc   :  { %p2256_p3 = scmp.ne.s32.totalorder %s33_s22, %s2255_s8  ;;  %p2261_p5 = scmp.lt.s32.totalorder %s2255_s8, %s2255_s8 }
   0xe   :  { %p2262_p6 = por %p2261_p5, %p2260_p4 }
  0x10   :  { %p2263_p7 = pnand %p2262_p6, %p2256_p3 }
  0x12   :  { %2266 = shalt.err (!%p2263_p7)
}
  0x13   :  { %s2387_s9 = smov 128   ;;  %s2388_s10 = smov 8  }
  0x14   :  { %38 = dma.hbm_to_vmem [thread:$0]  %s2809_s1, 2048, %s33_s22, [#allocation6], %s2387_s9, %s2387_s9, %s2388_s10  }
  0x15   :  { %s2267_s15 = scalar_lea.hbm %s2811_s3, 4096 }
  0x16   :  { %p2268_p8 = scmp.ne.s32.totalorder %s2811_s3, %s2267_s15  ;;  %p2271_p9 = scmp.lt.u32.totalorder %s2267_s15, %s2811_s3 }
  0x18   :  { %p2273_p10 = pnand %p2271_p9, %p2268_p8 }
  0x1a   :  { %2276 = shalt.err (!%p2273_p10)
}
  0x1b   :  { %s2277_s20 = scalar_lea.vmem %s2431_s24, 4096  ;;  %p2282_p12 = scmp.lt.s32.totalorder %s2431_s24, %s2431_s24 }
  0x1c   :  { %p2278_p11 = scmp.ne.s32.totalorder %s2431_s24, %s2277_s20  ;;  %p2283_p13 = scmp.lt.s32.totalorder %s2277_s20, %s2277_s20 }
  0x1e   :  { %p2284_p0 = por %p2283_p13, %p2282_p12 }
  0x20   :  { %p2285_p1 = pnand %p2284_p0, %p2278_p11 }
  0x22   :  { %2288 = shalt.err (!%p2285_p1)
}
  0x23   :  { %62 = dma.hbm_to_vmem [thread:$0]  %s2811_s3, 4096, %s2431_s24, [#allocation9], %s2387_s9, %s2387_s9, %s2388_s10  }
  0x24   :  { %s2389_s22 = smov [#allocation2]   ;;  %s2390_s25 = smov [#allocation7]  }
  0x25   :  { %s20_s23 = sshll.u32 %s2389_s22, 4  ;;  %s44_s26 = sshll.u32 %s2390_s25, 4  ;;  %s21_s23 = int_to_ptr.vmem [resolvable:$true] %s20_s23  ;;  %s2468_s26 = int_to_ptr.vmem [resolvable:$true] %s44_s26 }
  0x26   :  { %s2289_s29 = scalar_lea.hbm %s2808_s0, 4096 }
  0x27   :  { %p2290_p2 = scmp.ne.s32.totalorder %s2808_s0, %s2289_s29  ;;  %p2293_p3 = scmp.lt.u32.totalorder %s2289_s29, %s2808_s0 }
  0x29   :  { %p2295_p4 = pnand %p2293_p3, %p2290_p2 }
  0x2b   :  { %2298 = shalt.err (!%p2295_p4)
}
  0x2c   :  { %s2299_s3 = scalar_lea.vmem %s21_s23, 4096  ;;  %p2304_p6 = scmp.lt.s32.totalorder %s21_s23, %s21_s23 }
  0x2d   :  { %p2300_p5 = scmp.ne.s32.totalorder %s21_s23, %s2299_s3  ;;  %p2305_p7 = scmp.lt.s32.totalorder %s2299_s3, %s2299_s3 }
  0x2f   :  { %p2306_p8 = por %p2305_p7, %p2304_p6 }
  0x31   :  { %p2307_p9 = pnand %p2306_p8, %p2300_p5 }
  0x33   :  { %2310 = shalt.err (!%p2307_p9)
}
  0x34   :  { %26 = dma.hbm_to_vmem [thread:$0]  %s2808_s0, 4096, %s21_s23, [#allocation3], %s2387_s9, %s2387_s9, %s2388_s10  }
  0x35   :  { %s2311_s15 = scalar_lea.hbm %s2810_s2, 4096 }
  0x36   :  { %p2312_p10 = scmp.ne.s32.totalorder %s2810_s2, %s2311_s15  ;;  %p2315_p11 = scmp.lt.u32.totalorder %s2311_s15, %s2810_s2 }
  0x38   :  { %p2317_p12 = pnand %p2315_p11, %p2312_p10 }
  0x3a   :  { %2320 = shalt.err (!%p2317_p12)
}
  0x3b   :  { %s2321_s20 = scalar_lea.vmem %s2468_s26, 4096  ;;  %p2326_p0 = scmp.lt.s32.totalorder %s2468_s26, %s2468_s26 }
  0x3c   :  { %p2322_p13 = scmp.ne.s32.totalorder %s2468_s26, %s2321_s20  ;;  %p2327_p1 = scmp.lt.s32.totalorder %s2321_s20, %s2321_s20 }
  0x3e   :  { %p2328_p2 = por %p2327_p1, %p2326_p0 }
  0x40   :  { %p2329_p3 = pnand %p2328_p2, %p2322_p13 }
  0x42   :  { %2332 = shalt.err (!%p2329_p3)
}
  0x43   :  { %50 = dma.hbm_to_vmem [thread:$0]  %s2810_s2, 4096, %s2468_s26, [#allocation6], %s2387_s9, %s2387_s9, %s2388_s10  }
  0x44   :  { %s2391_s21 = smov [#allocation10]   ;;  %s2333_s27 = scalar_lea.hbm %s2812_s4, 2048 }
  0x45   :  { %s68_s22 = sshll.u32 %s2391_s21, 4  ;;  %p2334_p4 = scmp.ne.s32.totalorder %s2812_s4, %s2333_s27  ;;  %s69_s22 = int_to_ptr.vmem [resolvable:$true] %s68_s22 }
  0x46   :  { %p2337_p5 = scmp.lt.u32.totalorder %s2333_s27, %s2812_s4 }
  0x48   :  { %p2339_p6 = pnand %p2337_p5, %p2334_p4 }
  0x4a   :  { %2342 = shalt.err (!%p2339_p6)
}
  0x4b   :  { %s2343_s8 = scalar_lea.vmem %s69_s22, 2048  ;;  %p2348_p8 = scmp.lt.s32.totalorder %s69_s22, %s69_s22 }
  0x4c   :  { %p2344_p7 = scmp.ne.s32.totalorder %s69_s22, %s2343_s8  ;;  %p2349_p9 = scmp.lt.s32.totalorder %s2343_s8, %s2343_s8 }
  0x4e   :  { %p2350_p10 = por %p2349_p9, %p2348_p8 }
  0x50   :  { %p2351_p11 = pnand %p2350_p10, %p2344_p7 }
  0x52   :  { %2354 = shalt.err (!%p2351_p11)
}
  0x53   :  { %s2392_s2 = smov 64   ;;  %s2393_s26 = smov 4  }
  0x54   :  { %74 = dma.hbm_to_vmem [thread:$0]  %s2812_s4, 2048, %s69_s22, [#allocation9], %s2392_s2, %s2392_s2, %s2393_s26  }
  0x55   :  { %2377 = dma.done.wait [#allocation3], 4096  }
  0x56   :  { %2378 = vsyncadd [#allocation3], 4294963200 }
  0x57   :  { %2379 = dma.done.wait [#allocation6], 6144  }
  0x58   :  { %2380 = vsyncadd [#allocation6], 4294961152 }
  0x59   :  { %2381 = dma.done.wait [#allocation9], 6144  }
  0x5a   :  { %2382 = vsyncadd [#allocation9], 4294961152  ;;  %v2394_v0 = vmov 0   ;;  %v2109_v1 = vld [vmem:[#allocation5 + $0x4] ss:$8 sps:$4 sm:$0xff]   ;;  %v95_v27 = vld [vmem:[#allocation2 + $0x10] sm:$0xff] }
  0x5b   :  { %281 = vmatprep.mubr.bf16.mxu0 %v2394_v0  ;;  %v2111_v2 = vld [vmem:[#allocation5] ss:$8 sps:$4 sm:$0xff]   ;;  %249 = vmatprep.subr.bf16.mxu0 %v2109_v1  ;;  %v2112_v3 = vld [vmem:[#allocation5 + $0x14] ss:$8 sps:$4 sm:$0xff]   ;;  %v2114_v4 = vld [vmem:[#allocation5 + $0x10] ss:$8 sps:$4 sm:$0xff]  }
  0x5c   :  { %250 = vmatpush1.bf16.msra.mxu0 %v2111_v2  ;;  %v2115_v5 = vld [vmem:[#allocation5 + $0x24] ss:$8 sps:$4 sm:$0xff]   ;;  %v2117_v6 = vld [vmem:[#allocation5 + $0x20] ss:$8 sps:$4 sm:$0xff]   ;;  %v2118_v7 = vld [vmem:[#allocation5 + $0x34] ss:$8 sps:$4 sm:$0xff]  }
  0x5d   :  { %251 = vmatprep.subr.bf16.mxu0 %v2112_v3  ;;  %v2120_v8 = vld [vmem:[#allocation5 + $0x30] ss:$8 sps:$4 sm:$0xff]   ;;  %v2121_v9 = vld [vmem:[#allocation5 + $0x44] ss:$8 sps:$4 sm:$0xff]   ;;  %v2123_v10 = vld [vmem:[#allocation5 + $0x40] ss:$8 sps:$4 sm:$0xff]  }
  0x5e   :  { %v2124_v11 = vld [vmem:[#allocation5 + $0x54] ss:$8 sps:$4 sm:$0xff]   ;;  %v2126_v12 = vld [vmem:[#allocation5 + $0x50] ss:$8 sps:$4 sm:$0xff]   ;;  %v2127_v13 = vld [vmem:[#allocation5 + $0x64] ss:$8 sps:$4 sm:$0xff]  }
  0x5f   :  { %v2129_v14 = vld [vmem:[#allocation5 + $0x60] ss:$8 sps:$4 sm:$0xff]   ;;  %v2130_v15 = vld [vmem:[#allocation5 + $0x74] ss:$8 sps:$4 sm:$0xff]   ;;  %v2133_v16 = vld [vmem:[#allocation7 + $0x4] ss:$8 sps:$4 sm:$0xff]  }
  0x60   :  { %252 = vmatpush1.bf16.msra.mxu0 %v2114_v4  ;;  %v2135_v17 = vld [vmem:[#allocation7] ss:$8 sps:$4 sm:$0xff]   ;;  %v2136_v18 = vld [vmem:[#allocation7 + $0x14] ss:$8 sps:$4 sm:$0xff]   ;;  %v2132_v19 = vld [vmem:[#allocation5 + $0x70] ss:$8 sps:$4 sm:$0xff]   ;;  %743 = vmatprep.subr.bf16.mxu1 %v2133_v16 }
  0x61   :  { %253 = vmatprep.subr.bf16.mxu0 %v2115_v5  ;;  %v93_v20 = vld [vmem:[#allocation2] sm:$0xff]  ;;  %v94_v21 = vld [vmem:[#allocation2 + $0x8] sm:$0xff]  ;;  %744 = vmatpush1.bf16.msra.mxu1 %v2135_v17  ;;  %v2138_v22 = vld [vmem:[#allocation7 + $0x10] ss:$8 sps:$4 sm:$0xff]  }
  0x62   :  { %v125_v23 = vpack.c.bf16 %v94_v21, %v93_v20  ;;  %745 = vmatprep.subr.bf16.mxu1 %v2136_v18  ;;  %v2139_v24 = vld [vmem:[#allocation7 + $0x24] ss:$8 sps:$4 sm:$0xff]   ;;  %v2141_v25 = vld [vmem:[#allocation7 + $0x20] ss:$8 sps:$4 sm:$0xff]   ;;  %v2142_v26 = vld [vmem:[#allocation7 + $0x34] ss:$8 sps:$4 sm:$0xff]  }
  0x63   :  { %v96_v28 = vld [vmem:[#allocation2 + $0x18] sm:$0xff]  ;;  %v2145_v31 = vld [vmem:[#allocation7 + $0x44] ss:$8 sps:$4 sm:$0xff]   ;;  %v2147_v32 = vld [vmem:[#allocation7 + $0x40] ss:$8 sps:$4 sm:$0xff]  }
  0x64   :  { %254 = vmatpush1.bf16.msra.mxu0 %v2117_v6  ;;  %v2144_v29 = vld [vmem:[#allocation7 + $0x30] ss:$8 sps:$4 sm:$0xff]   ;;  %v126_v30 = vpack.c.bf16 %v96_v28, %v95_v27  ;;  %v2148_v33 = vld [vmem:[#allocation7 + $0x54] ss:$8 sps:$4 sm:$0xff]   ;;  %v97_v34 = vld [vmem:[#allocation2 + $0x20] sm:$0xff] }
  0x65   :  { %255 = vmatprep.subr.bf16.mxu0 %v2118_v7  ;;  %746 = vmatpush1.bf16.msra.mxu1 %v2138_v22  ;;  %v98_v35 = vld [vmem:[#allocation2 + $0x28] sm:$0xff]  ;;  %v2150_v36 = vld [vmem:[#allocation7 + $0x50] ss:$8 sps:$4 sm:$0xff]   ;;  %v2154_v40 = vld [vmem:[#allocation7 + $0x74] ss:$8 sps:$4 sm:$0xff]  }
  0x66   :  { %747 = vmatprep.subr.bf16.mxu1 %v2139_v24  ;;  %v2151_v37 = vld [vmem:[#allocation7 + $0x64] ss:$8 sps:$4 sm:$0xff]   ;;  %v127_v38 = vpack.c.bf16 %v98_v35, %v97_v34  ;;  %v2153_v39 = vld [vmem:[#allocation7 + $0x60] ss:$8 sps:$4 sm:$0xff]   ;;  %v99_v41 = vld [vmem:[#allocation2 + $0x30] sm:$0xff] }
  0x67   :  { %v100_v42 = vld [vmem:[#allocation2 + $0x38] sm:$0xff]  ;;  %v2157_v44 = vld [vmem:[#allocation7 + $0x84] ss:$8 sps:$4 sm:$0xff]   ;;  %v2159_v46 = vld [vmem:[#allocation7 + $0x80] ss:$8 sps:$4 sm:$0xff]  }
  0x68   :  { %256 = vmatpush1.bf16.msra.mxu0 %v2120_v8  ;;  %v2156_v43 = vld [vmem:[#allocation7 + $0x70] ss:$8 sps:$4 sm:$0xff]   ;;  %v128_v45 = vpack.c.bf16 %v100_v42, %v99_v41  ;;  %v2160_v47 = vld [vmem:[#allocation7 + $0x94] ss:$8 sps:$4 sm:$0xff]   ;;  %v101_v48 = vld [vmem:[#allocation2 + $0x40] sm:$0xff] }
  0x69   :  { %257 = vmatprep.subr.bf16.mxu0 %v2121_v9  ;;  %748 = vmatpush1.bf16.msra.mxu1 %v2141_v25  ;;  %v102_v49 = vld [vmem:[#allocation2 + $0x48] sm:$0xff]  ;;  %v2162_v50 = vld [vmem:[#allocation7 + $0x90] ss:$8 sps:$4 sm:$0xff]   ;;  %v2166_v54 = vld [vmem:[#allocation7 + $0xb4] ss:$8 sps:$4 sm:$0xff]  }
  0x6a   :  { %749 = vmatprep.subr.bf16.mxu1 %v2142_v26  ;;  %v129_v51 = vpack.c.bf16 %v102_v49, %v101_v48  ;;  %v2163_v52 = vld [vmem:[#allocation7 + $0xa4] ss:$8 sps:$4 sm:$0xff]   ;;  %v2165_v53 = vld [vmem:[#allocation7 + $0xa0] ss:$8 sps:$4 sm:$0xff]   ;;  %v103_v55 = vld [vmem:[#allocation2 + $0x50] sm:$0xff] }
  0x6b   :  { %v104_v56 = vld [vmem:[#allocation2 + $0x58] sm:$0xff]  ;;  %v2169_v59 = vld [vmem:[#allocation7 + $0xc4] ss:$8 sps:$4 sm:$0xff]   ;;  %v2171_v60 = vld [vmem:[#allocation7 + $0xc0] ss:$8 sps:$4 sm:$0xff]  }
  0x6c   :  { %258 = vmatpush1.bf16.msra.mxu0 %v2123_v10  ;;  %v2168_v57 = vld [vmem:[#allocation7 + $0xb0] ss:$8 sps:$4 sm:$0xff]   ;;  %v130_v58 = vpack.c.bf16 %v104_v56, %v103_v55  ;;  %v2172_v61 = vld [vmem:[#allocation7 + $0xd4] ss:$8 sps:$4 sm:$0xff]   ;;  %v105_v62 = vld [vmem:[#allocation2 + $0x60] sm:$0xff] }
  0x6d   :  { %259 = vmatprep.subr.bf16.mxu0 %v2124_v11  ;;  %750 = vmatpush1.bf16.msra.mxu1 %v2144_v29  ;;  %v106_v63 = vld [vmem:[#allocation2 + $0x68] sm:$0xff]  ;;  %v107_v2 = vld [vmem:[#allocation2 + $0x70] sm:$0xff]  ;;  %v108_v3 = vld [vmem:[#allocation2 + $0x78] sm:$0xff] }
  0x6e   :  { %751 = vmatprep.subr.bf16.mxu1 %v2145_v31  ;;  %v131_v1 = vpack.c.bf16 %v106_v63, %v105_v62  ;;  %v132_v4 = vpack.c.bf16 %v108_v3, %v107_v2  ;;  %v109_v5 = vld [vmem:[#allocation2 + $0x80] sm:$0xff]  ;;  %v110_v6 = vld [vmem:[#allocation2 + $0x88] sm:$0xff]  ;;  %v111_v8 = vld [vmem:[#allocation2 + $0x90] sm:$0xff] }
  0x6f   :  { %v133_v7 = vpack.c.bf16 %v110_v6, %v109_v5  ;;  %v112_v9 = vld [vmem:[#allocation2 + $0x98] sm:$0xff]  ;;  %v113_v11 = vld [vmem:[#allocation2 + $0xa0] sm:$0xff]  ;;  %v118_v22 = vld [vmem:[#allocation2 + $0xc8] sm:$0xff] }
  0x70   :  { %260 = vmatpush1.bf16.msra.mxu0 %v2126_v12  ;;  %v134_v10 = vpack.c.bf16 %v112_v9, %v111_v8  ;;  %v114_v12 = vld [vmem:[#allocation2 + $0xa8] sm:$0xff]  ;;  %v2174_v16 = vld [vmem:[#allocation7 + $0xd0] ss:$8 sps:$4 sm:$0xff]   ;;  %v2178_v20 = vld [vmem:[#allocation7 + $0xf4] ss:$8 sps:$4 sm:$0xff]  }
  0x71   :  { %261 = vmatprep.subr.bf16.mxu0 %v2127_v13  ;;  %752 = vmatpush1.bf16.msra.mxu1 %v2147_v32  ;;  %v135_v13 = vpack.c.bf16 %v114_v12, %v113_v11  ;;  %v2175_v18 = vld [vmem:[#allocation7 + $0xe4] ss:$8 sps:$4 sm:$0xff]   ;;  %v119_v25 = vld [vmem:[#allocation2 + $0xd0] sm:$0xff]  ;;  %v120_v26 = vld [vmem:[#allocation2 + $0xd8] sm:$0xff] }
  0x72   :  { %753 = vmatprep.subr.bf16.mxu1 %v2148_v33  ;;  %v117_v21 = vld [vmem:[#allocation2 + $0xc0] sm:$0xff]  ;;  %v138_v27 = vpack.c.bf16 %v120_v26, %v119_v25  ;;  %v122_v29 = vld [vmem:[#allocation2 + $0xe8] sm:$0xff]  ;;  %v123_v31 = vld [vmem:[#allocation2 + $0xf0] sm:$0xff] }
  0x73   :  { %v137_v24 = vpack.c.bf16 %v118_v22, %v117_v21  ;;  %v121_v28 = vld [vmem:[#allocation2 + $0xe0] sm:$0xff]  ;;  %v124_v32 = vld [vmem:[#allocation2 + $0xf8] sm:$0xff] }
  0x74   :  { %262 = vmatpush1.bf16.msra.mxu0 %v2129_v14  ;;  %v115_v14 = vld [vmem:[#allocation2 + $0xb0] sm:$0xff]  ;;  %v140_v33 = vpack.c.bf16 %v124_v32, %v123_v31  ;;  %v2181_v34 = vld [vmem:[#allocation8] ss:$8 sps:$4 sm:$0xff]   ;;  %v2183_v35 = vld [vmem:[#allocation8 + $0x4] ss:$8 sps:$4 sm:$0xff]  }
  0x75   :  { %263 = vmatprep.subr.bf16.mxu0 %v2130_v15  ;;  %754 = vmatpush1.bf16.msra.mxu1 %v2150_v36  ;;  %v116_v15 = vld [vmem:[#allocation2 + $0xb8] sm:$0xff]  ;;  %v159_v36 = vlaneseq  ;;  %v2187_v42 = vld [vmem:[#allocation8 + $0x20] ss:$8 sps:$4 sm:$0xff]   ;;  %v2195_v56 = vld [vmem:[#allocation8 + $0x44] ss:$8 sps:$4 sm:$0xff]  }
  0x76   :  { %755 = vmatprep.subr.bf16.mxu1 %v2151_v37  ;;  %v136_v17 = vpack.c.bf16 %v116_v15, %v115_v14  ;;  %v2184_v37 = vld [vmem:[#allocation8 + $0x10] ss:$8 sps:$4 sm:$0xff]   ;;  %v2192_v48 = vld [vmem:[#allocation8 + $0x34] ss:$8 sps:$4 sm:$0xff]   ;;  %v2193_v55 = vld [vmem:[#allocation8 + $0x40] ss:$8 sps:$4 sm:$0xff]  }
  0x77   :  { %v2199_v11 = vld [vmem:[#allocation8 + $0x60] ss:$8 sps:$4 sm:$0xff]   ;;  %v2207_v22 = vld [vmem:[#allocation8 + $0x84] ss:$8 sps:$4 sm:$0xff]   ;;  %v2210_v31 = vld [vmem:[#allocation8 + $0x94] ss:$8 sps:$4 sm:$0xff]  }
  0x78   :  { %264 = vmatpush1.bf16.msra.mxu0 %v2132_v19  ;;  %v2177_v19 = vld [vmem:[#allocation7 + $0xe0] ss:$8 sps:$4 sm:$0xff]  }
  0x79   :  { %756 = vmatpush1.bf16.msra.mxu1 %v2153_v39  ;;  %1237 = vmatprep.subr.bf16.mxu0 %v2183_v35  ;;  %v160_v39 = vshrl.u32 %v159_v36, 7 }
  0x7a   :  { %757 = vmatprep.subr.bf16.mxu1 %v2154_v40 }
  0x7b   :  { %282 = vmatmul.mubr.bf16.vlgmr.msra.gmra.mrb[0].mxu0 %v125_v23  ;;  %v2180_v23 = vld [vmem:[#allocation7 + $0xf0] ss:$8 sps:$4 sm:$0xff]   ;;  %v2533_v40 = vsub.s32 0, %v160_v39  ;;  %v2538_v41 = vsub.s32 1, %v160_v39 }
  0x7c   :  { %291 = vmatprep.mubr.bf16.mxu0 %v2394_v0  ;;  %1238 = vmatpush1.bf16.msra.mxu0 %v2181_v34 }
  0x7d   :  { %758 = vmatpush1.bf16.msra.mxu1 %v2156_v43  ;;  %v2189_v43 = vld [vmem:[#allocation8 + $0x24] ss:$8 sps:$4 sm:$0xff]  }
  0x7e   :  { %759 = vmatprep.subr.bf16.mxu1 %v2157_v44 }
  0x81   :  { %760 = vmatpush1.bf16.msra.mxu1 %v2159_v46 }
  0x82   :  { %761 = vmatprep.subr.bf16.mxu1 %v2160_v47  ;;  %v2190_v47 = vld [vmem:[#allocation8 + $0x30] ss:$8 sps:$4 sm:$0xff]  }
  0x83   :  { %292 = vmatmul.mubr.bf16.gmra.mrb[4].mxu0 %v126_v30  ;;  %v139_v30 = vpack.c.bf16 %v122_v29, %v121_v28  ;;  %v2205_v29 = vld [vmem:[#allocation8 + $0x80] ss:$8 sps:$4 sm:$0xff]  }
  0x84   :  { %301 = vmatprep.mubr.bf16.mxu0 %v2394_v0 }
  0x85   :  { %762 = vmatpush1.bf16.msra.mxu1 %v2162_v50 }
  0x86   :  { %763 = vmatprep.subr.bf16.mxu1 %v2163_v52 }
  0x89   :  { %764 = vmatpush1.bf16.msra.mxu1 %v2165_v53 }
  0x8a   :  { %765 = vmatprep.subr.bf16.mxu1 %v2166_v54 }
  0x8b   :  { %302 = vmatmul.mubr.bf16.gmra.mrb[8].mxu0 %v127_v38  ;;  %v2186_v38 = vld [vmem:[#allocation8 + $0x14] ss:$8 sps:$4 sm:$0xff]  }
  0x8c   :  { %311 = vmatprep.mubr.bf16.mxu0 %v2394_v0  ;;  %1239 = vmatprep.subr.bf16.mxu0 %v2186_v38 }
  0x8d   :  { %766 = vmatpush1.bf16.msra.mxu1 %v2168_v57  ;;  %1240 = vmatpush1.bf16.msra.mxu0 %v2184_v37  ;;  %v2208_v37 = vld [vmem:[#allocation8 + $0x90] ss:$8 sps:$4 sm:$0xff]  }
  0x8e   :  { %767 = vmatprep.subr.bf16.mxu1 %v2169_v59  ;;  %1241 = vmatprep.subr.bf16.mxu0 %v2189_v43 }
  0x91   :  { %768 = vmatpush1.bf16.msra.mxu1 %v2171_v60  ;;  %1242 = vmatpush1.bf16.msra.mxu0 %v2187_v42 }
  0x92   :  { %769 = vmatprep.subr.bf16.mxu1 %v2172_v61  ;;  %1243 = vmatprep.subr.bf16.mxu0 %v2192_v48 }
  0x93   :  { %312 = vmatmul.mubr.bf16.gmra.mrb[12].mxu0 %v128_v45 }
  0x94   :  { %321 = vmatprep.mubr.bf16.mxu0 %v2394_v0 }
  0x95   :  { %770 = vmatpush1.bf16.msra.mxu1 %v2174_v16  ;;  %1244 = vmatpush1.bf16.msra.mxu0 %v2190_v47 }
  0x96   :  { %771 = vmatprep.subr.bf16.mxu1 %v2175_v18  ;;  %1245 = vmatprep.subr.bf16.mxu0 %v2195_v56 }
  0x99   :  { %772 = vmatpush1.bf16.msra.mxu1 %v2177_v19  ;;  %1246 = vmatpush1.bf16.msra.mxu0 %v2193_v55  ;;  %v2202_v19 = vld [vmem:[#allocation8 + $0x70] ss:$8 sps:$4 sm:$0xff]  }
  0x9a   :  { %773 = vmatprep.subr.bf16.mxu1 %v2178_v20 }
  0x9b   :  { %322 = vmatmul.mubr.bf16.gmra.mrb[16].mxu0 %v129_v51 }
  0x9c   :  { %331 = vmatprep.mubr.bf16.mxu0 %v2394_v0 }
  0x9d   :  { %774 = vmatpush1.bf16.msra.mxu1 %v2180_v23 }
  0xa3   :  { %332 = vmatmul.mubr.bf16.gmra.mrb[20].mxu0 %v130_v58  ;;  %v2198_v58 = vld [vmem:[#allocation8 + $0x54] ss:$8 sps:$4 sm:$0xff]  }
  0xa4   :  { %341 = vmatprep.mubr.bf16.mxu0 %v2394_v0  ;;  %1247 = vmatprep.subr.bf16.mxu0 %v2198_v58  ;;  %v2214_v58 = vld [vmem:[#allocation8 + $0xb0] ss:$8 sps:$4 sm:$0xff]  }
  0xab   :  { %342 = vmatmul.mubr.bf16.gmra.mrb[24].mxu0 %v131_v1  ;;  %v2196_v1 = vld [vmem:[#allocation8 + $0x50] ss:$8 sps:$4 sm:$0xff]  }
  0xac   :  { %351 = vmatprep.mubr.bf16.mxu0 %v2394_v0  ;;  %1248 = vmatpush1.bf16.msra.mxu0 %v2196_v1 }
  0xb3   :  { %352 = vmatmul.mubr.bf16.gmra.mrb[28].mxu0 %v132_v4  ;;  %v2201_v4 = vld [vmem:[#allocation8 + $0x64] ss:$8 sps:$4 sm:$0xff]  }
  0xb4   :  { %361 = vmatprep.mubr.bf16.mxu0 %v2394_v0  ;;  %1249 = vmatprep.subr.bf16.mxu0 %v2201_v4 }
  0xb5   :  { %1250 = vmatpush1.bf16.msra.mxu0 %v2199_v11 }
  0xbb   :  { %362 = vmatmul.mubr.bf16.gmra.mrb[32].mxu0 %v133_v7 }
  0xbc   :  { %371 = vmatprep.mubr.bf16.mxu0 %v2394_v0 }
  0xc3   :  { %372 = vmatmul.mubr.bf16.gmra.mrb[36].mxu0 %v134_v10 }
  0xc4   :  { %381 = vmatprep.mubr.bf16.mxu0 %v2394_v0 }
  0xcb   :  { %382 = vmatmul.mubr.bf16.gmra.mrb[40].mxu0 %v135_v13  ;;  %v2204_v13 = vld [vmem:[#allocation8 + $0x74] ss:$8 sps:$4 sm:$0xff]  }
  0xcc   :  { %391 = vmatprep.mubr.bf16.mxu0 %v2394_v0  ;;  %1251 = vmatprep.subr.bf16.mxu0 %v2204_v13  ;;  %v2220_v13 = vld [vmem:[#allocation8 + $0xd0] ss:$8 sps:$4 sm:$0xff]  }
  0xcd   :  { %1252 = vmatpush1.bf16.msra.mxu0 %v2202_v19 }
  0xce   :  { %1253 = vmatprep.subr.bf16.mxu0 %v2207_v22 }
  0xd1   :  { %1254 = vmatpush1.bf16.msra.mxu0 %v2205_v29 }
  0xd2   :  { %1255 = vmatprep.subr.bf16.mxu0 %v2210_v31 }
  0xd3   :  { %392 = vmatmul.mubr.bf16.gmra.mrb[44].mxu0 %v136_v17 }
  0xd4   :  { %401 = vmatprep.mubr.bf16.mxu0 %v2394_v0 }
  0xd5   :  { %1256 = vmatpush1.bf16.msra.mxu0 %v2208_v37 }
  0xdb   :  { %402 = vmatmul.mubr.bf16.gmra.mrb[48].mxu0 %v137_v24 }
  0xdc   :  { %411 = vmatprep.mubr.bf16.mxu0 %v2394_v0 }
  0xe3   :  { %412 = vmatmul.mubr.bf16.gmra.mrb[52].mxu0 %v138_v27 }
  0xe4   :  { %421 = vmatprep.mubr.bf16.mxu0 %v2394_v0 }
  0xeb   :  { %422 = vmatmul.mubr.bf16.gmra.mrb[56].mxu0 %v139_v30 }
  0xec   :  { %431 = vmatprep.mubr.bf16.mxu0 %v2394_v0  ;;  %v157_v0 = vld [vmem:[%s2813_s5] ss:$4 sm:$0x3] }
  0xed   :  { %v2541_v44 = vrot.slane %v157_v0, %v2533_v40  ;;  %v2544_v45 = vrot.slane %v157_v0, %v2538_v41  ;;  %v2213_v0 = vld [vmem:[#allocation8 + $0xa4] ss:$8 sps:$4 sm:$0xff]  }
  0xee   :  { %1257 = vmatprep.subr.bf16.mxu0 %v2213_v0 }
  0xf3   :  { %432 = vmatmul.mubr.bf16.gmra.mrb[60].mxu0 %v140_v33 }
 0x14e   :  { %v283_v46 = vpop.f32.mrb[0].mxu0 }
 0x14f   :  { %v284_v49 = vadd.f32 %v283_v46, %v2541_v44  ;;  %v285_v50 = vpop.f32.mrb[1].mxu0 }
 0x150   :  { %v286_v51 = vadd.f32 %v285_v50, %v2544_v45  ;;  %v287_v52 = vpop.f32.mrb[2].mxu0  ;;  %v2211_v50 = vld [vmem:[#allocation8 + $0xa0] ss:$8 sps:$4 sm:$0xff]  }
 0x151   :  { %v288_v53 = vadd.f32 %v287_v52, %v2541_v44  ;;  %v289_v54 = vpop.f32.mrb[3].mxu0  ;;  %v442_v59 = vmax.f32 %v284_v49, 0.0  ;;  %v2216_v52 = vld [vmem:[#allocation8 + $0xb4] ss:$8 sps:$4 sm:$0xff]   ;;  %1258 = vmatpush1.bf16.msra.mxu0 %v2211_v50 }
 0x152   :  { %v290_v57 = vadd.f32 %v289_v54, %v2544_v45  ;;  %v443_v61 = vmax.f32 %v286_v51, 0.0  ;;  %1259 = vmatprep.subr.bf16.mxu0 %v2216_v52 }
 0x153   :  { %v444_v60 = vmax.f32 %v288_v53, 0.0 }
 0x154   :  { %v445_v62 = vmax.f32 %v290_v57, 0.0 }
 0x155   :  { %v506_v63 = vpack.c.bf16 %v444_v60, %v442_v59  ;;  %1260 = vmatpush1.bf16.msra.mxu0 %v2214_v58 }
 0x156   :  { %v293_v2 = vpop.f32.mrb[4].mxu0  ;;  %v507_v3 = vpack.c.bf16 %v445_v62, %v443_v61  ;;  %v2219_v61 = vld [vmem:[#allocation8 + $0xc4] ss:$8 sps:$4 sm:$0xff]  }
 0x157   :  { %v294_v5 = vadd.f32 %v293_v2, %v2541_v44  ;;  %v295_v6 = vpop.f32.mrb[5].mxu0  ;;  %1261 = vmatprep.subr.bf16.mxu0 %v2219_v61 }
 0x158   :  { %v296_v7 = vadd.f32 %v295_v6, %v2544_v45  ;;  %v297_v8 = vpop.f32.mrb[6].mxu0  ;;  %775 = vmatprep.mubr.bf16.mxu1 %v507_v3 }
 0x159   :  { %v298_v9 = vadd.f32 %v297_v8, %v2541_v44  ;;  %v299_v10 = vpop.f32.mrb[7].mxu0  ;;  %776 = vmatmul.mubr.bf16.vlgmr.msra.gmra.mrb[0].mxu1 %v506_v63  ;;  %v446_v14 = vmax.f32 %v294_v5, 0.0  ;;  %v2217_v5 = vld [vmem:[#allocation8 + $0xc0] ss:$8 sps:$4 sm:$0xff]  }
 0x15a   :  { %v300_v12 = vadd.f32 %v299_v10, %v2544_v45  ;;  %v447_v16 = vmax.f32 %v296_v7, 0.0  ;;  %v2222_v7 = vld [vmem:[#allocation8 + $0xd4] ss:$8 sps:$4 sm:$0xff]   ;;  %1262 = vmatpush1.bf16.msra.mxu0 %v2217_v5 }
 0x15b   :  { %v448_v15 = vmax.f32 %v298_v9, 0.0  ;;  %1263 = vmatprep.subr.bf16.mxu0 %v2222_v7 }
 0x15c   :  { %v449_v17 = vmax.f32 %v300_v12, 0.0 }
 0x15d   :  { %v508_v18 = vpack.c.bf16 %v448_v15, %v446_v14 }
 0x15e   :  { %v509_v20 = vpack.c.bf16 %v449_v17, %v447_v16  ;;  %v303_v21 = vpop.f32.mrb[8].mxu0  ;;  %v2225_v16 = vld [vmem:[#allocation8 + $0xe4] ss:$8 sps:$4 sm:$0xff]   ;;  %1264 = vmatpush1.bf16.msra.mxu0 %v2220_v13 }
 0x15f   :  { %v304_v23 = vadd.f32 %v303_v21, %v2541_v44  ;;  %v305_v24 = vpop.f32.mrb[9].mxu0  ;;  %1265 = vmatprep.subr.bf16.mxu0 %v2225_v16 }
 0x160   :  { %v306_v25 = vadd.f32 %v305_v24, %v2544_v45  ;;  %v307_v26 = vpop.f32.mrb[10].mxu0  ;;  %785 = vmatprep.mubr.bf16.mxu1 %v509_v20 }
 0x161   :  { %v308_v27 = vadd.f32 %v307_v26, %v2541_v44  ;;  %v309_v28 = vpop.f32.mrb[11].mxu0  ;;  %786 = vmatmul.mubr.bf16.gmra.mrb[4].mxu1 %v508_v18  ;;  %v450_v32 = vmax.f32 %v304_v23, 0.0  ;;  %v2223_v23 = vld [vmem:[#allocation8 + $0xe0] ss:$8 sps:$4 sm:$0xff]  }
 0x162   :  { %v310_v30 = vadd.f32 %v309_v28, %v2544_v45  ;;  %v451_v34 = vmax.f32 %v306_v25, 0.0  ;;  %1266 = vmatpush1.bf16.msra.mxu0 %v2223_v23 }
 0x163   :  { %v452_v33 = vmax.f32 %v308_v27, 0.0 }
 0x164   :  { %v453_v35 = vmax.f32 %v310_v30, 0.0 }
 0x165   :  { %v510_v36 = vpack.c.bf16 %v452_v33, %v450_v32 }
 0x166   :  { %v511_v38 = vpack.c.bf16 %v453_v35, %v451_v34  ;;  %v313_v39 = vpop.f32.mrb[12].mxu0 }
 0x167   :  { %v314_v42 = vadd.f32 %v313_v39, %v2541_v44  ;;  %v315_v43 = vpop.f32.mrb[13].mxu0 }
 0x168   :  { %v316_v46 = vadd.f32 %v315_v43, %v2544_v45  ;;  %v317_v47 = vpop.f32.mrb[14].mxu0  ;;  %795 = vmatprep.mubr.bf16.mxu1 %v511_v38 }
 0x169   :  { %v318_v48 = vadd.f32 %v317_v47, %v2541_v44  ;;  %v319_v49 = vpop.f32.mrb[15].mxu0  ;;  %796 = vmatmul.mubr.bf16.gmra.mrb[8].mxu1 %v510_v36  ;;  %v454_v53 = vmax.f32 %v314_v42, 0.0 }
 0x16a   :  { %v320_v51 = vadd.f32 %v319_v49, %v2544_v45  ;;  %v455_v55 = vmax.f32 %v316_v46, 0.0 }
 0x16b   :  { %v456_v54 = vmax.f32 %v318_v48, 0.0 }
 0x16c   :  { %v457_v56 = vmax.f32 %v320_v51, 0.0 }
 0x16d   :  { %v512_v57 = vpack.c.bf16 %v456_v54, %v454_v53 }
 0x16e   :  { %v513_v59 = vpack.c.bf16 %v457_v56, %v455_v55  ;;  %v323_v60 = vpop.f32.mrb[16].mxu0 }
 0x16f   :  { %v324_v62 = vadd.f32 %v323_v60, %v2541_v44  ;;  %v325_v63 = vpop.f32.mrb[17].mxu0 }
 0x170   :  { %v326_v1 = vadd.f32 %v325_v63, %v2544_v45  ;;  %v327_v2 = vpop.f32.mrb[18].mxu0  ;;  %805 = vmatprep.mubr.bf16.mxu1 %v513_v59 }
 0x171   :  { %v328_v3 = vadd.f32 %v327_v2, %v2541_v44  ;;  %v329_v4 = vpop.f32.mrb[19].mxu0  ;;  %806 = vmatmul.mubr.bf16.gmra.mrb[12].mxu1 %v512_v57  ;;  %v458_v8 = vmax.f32 %v324_v62, 0.0 }
 0x172   :  { %v330_v6 = vadd.f32 %v329_v4, %v2544_v45  ;;  %v459_v10 = vmax.f32 %v326_v1, 0.0 }
 0x173   :  { %v460_v9 = vmax.f32 %v328_v3, 0.0 }
 0x174   :  { %v461_v11 = vmax.f32 %v330_v6, 0.0 }
 0x175   :  { %v514_v12 = vpack.c.bf16 %v460_v9, %v458_v8 }
 0x176   :  { %v515_v14 = vpack.c.bf16 %v461_v11, %v459_v10  ;;  %v333_v15 = vpop.f32.mrb[20].mxu0 }
 0x177   :  { %v334_v17 = vadd.f32 %v333_v15, %v2541_v44  ;;  %v335_v18 = vpop.f32.mrb[21].mxu0 }
 0x178   :  { %v336_v19 = vadd.f32 %v335_v18, %v2544_v45  ;;  %v337_v20 = vpop.f32.mrb[22].mxu0  ;;  %815 = vmatprep.mubr.bf16.mxu1 %v515_v14 }
 0x179   :  { %v338_v21 = vadd.f32 %v337_v20, %v2541_v44  ;;  %v339_v22 = vpop.f32.mrb[23].mxu0  ;;  %816 = vmatmul.mubr.bf16.gmra.mrb[16].mxu1 %v514_v12  ;;  %v462_v25 = vmax.f32 %v334_v17, 0.0 }
 0x17a   :  { %v340_v24 = vadd.f32 %v339_v22, %v2544_v45  ;;  %v463_v27 = vmax.f32 %v336_v19, 0.0 }
 0x17b   :  { %v464_v26 = vmax.f32 %v338_v21, 0.0 }
 0x17c   :  { %v465_v28 = vmax.f32 %v340_v24, 0.0 }
 0x17d   :  { %v516_v29 = vpack.c.bf16 %v464_v26, %v462_v25 }
 0x17e   :  { %v517_v30 = vpack.c.bf16 %v465_v28, %v463_v27  ;;  %v343_v31 = vpop.f32.mrb[24].mxu0 }
 0x17f   :  { %v344_v32 = vadd.f32 %v343_v31, %v2541_v44  ;;  %v345_v33 = vpop.f32.mrb[25].mxu0 }
 0x180   :  { %v346_v34 = vadd.f32 %v345_v33, %v2544_v45  ;;  %v347_v35 = vpop.f32.mrb[26].mxu0  ;;  %825 = vmatprep.mubr.bf16.mxu1 %v517_v30 }
 0x181   :  { %v348_v36 = vadd.f32 %v347_v35, %v2541_v44  ;;  %v349_v37 = vpop.f32.mrb[27].mxu0  ;;  %826 = vmatmul.mubr.bf16.gmra.mrb[20].mxu1 %v516_v29  ;;  %v466_v39 = vmax.f32 %v344_v32, 0.0 }
 0x182   :  { %v350_v38 = vadd.f32 %v349_v37, %v2544_v45  ;;  %v467_v42 = vmax.f32 %v346_v34, 0.0 }
 0x183   :  { %v468_v0 = vmax.f32 %v348_v36, 0.0 }
 0x184   :  { %v469_v43 = vmax.f32 %v350_v38, 0.0 }
 0x185   :  { %v518_v46 = vpack.c.bf16 %v468_v0, %v466_v39 }
 0x186   :  { %v519_v47 = vpack.c.bf16 %v469_v43, %v467_v42  ;;  %v353_v48 = vpop.f32.mrb[28].mxu0 }
 0x187   :  { %v354_v49 = vadd.f32 %v353_v48, %v2541_v44  ;;  %v355_v50 = vpop.f32.mrb[29].mxu0 }
 0x188   :  { %v356_v51 = vadd.f32 %v355_v50, %v2544_v45  ;;  %v357_v52 = vpop.f32.mrb[30].mxu0  ;;  %835 = vmatprep.mubr.bf16.mxu1 %v519_v47 }
 0x189   :  { %v358_v53 = vadd.f32 %v357_v52, %v2541_v44  ;;  %v359_v54 = vpop.f32.mrb[31].mxu0  ;;  %836 = vmatmul.mubr.bf16.gmra.mrb[24].mxu1 %v518_v46  ;;  %v470_v56 = vmax.f32 %v354_v49, 0.0 }
 0x18a   :  { %v360_v55 = vadd.f32 %v359_v54, %v2544_v45  ;;  %v471_v58 = vmax.f32 %v356_v51, 0.0 }
 0x18b   :  { %v472_v57 = vmax.f32 %v358_v53, 0.0 }
 0x18c   :  { %v473_v59 = vmax.f32 %v360_v55, 0.0 }
 0x18d   :  { %v520_v60 = vpack.c.bf16 %v472_v57, %v470_v56 }
 0x18e   :  { %v521_v61 = vpack.c.bf16 %v473_v59, %v471_v58  ;;  %v363_v62 = vpop.f32.mrb[32].mxu0 }
 0x18f   :  { %v364_v63 = vadd.f32 %v363_v62, %v2541_v44  ;;  %v365_v1 = vpop.f32.mrb[33].mxu0 }
 0x190   :  { %v366_v2 = vadd.f32 %v365_v1, %v2544_v45  ;;  %v367_v3 = vpop.f32.mrb[34].mxu0  ;;  %845 = vmatprep.mubr.bf16.mxu1 %v521_v61 }
 0x191   :  { %v368_v4 = vadd.f32 %v367_v3, %v2541_v44  ;;  %v369_v5 = vpop.f32.mrb[35].mxu0  ;;  %846 = vmatmul.mubr.bf16.gmra.mrb[28].mxu1 %v520_v60  ;;  %v474_v7 = vmax.f32 %v364_v63, 0.0 }
 0x192   :  { %v370_v6 = vadd.f32 %v369_v5, %v2544_v45  ;;  %v475_v9 = vmax.f32 %v366_v2, 0.0  ;;  %v2228_v2 = vld [vmem:[#allocation8 + $0xf4] ss:$8 sps:$4 sm:$0xff]  }
 0x193   :  { %v476_v8 = vmax.f32 %v368_v4, 0.0  ;;  %v2226_v4 = vld [vmem:[#allocation8 + $0xf0] ss:$8 sps:$4 sm:$0xff]   ;;  %1267 = vmatprep.subr.bf16.mxu0 %v2228_v2 }
 0x194   :  { %v477_v10 = vmax.f32 %v370_v6, 0.0  ;;  %1268 = vmatpush1.bf16.msra.mxu0 %v2226_v4 }
 0x195   :  { %v522_v11 = vpack.c.bf16 %v476_v8, %v474_v7 }
 0x196   :  { %v523_v12 = vpack.c.bf16 %v477_v10, %v475_v9  ;;  %v373_v13 = vpop.f32.mrb[36].mxu0 }
 0x197   :  { %v374_v14 = vadd.f32 %v373_v13, %v2541_v44  ;;  %v375_v15 = vpop.f32.mrb[37].mxu0 }
 0x198   :  { %v376_v16 = vadd.f32 %v375_v15, %v2544_v45  ;;  %v377_v17 = vpop.f32.mrb[38].mxu0  ;;  %855 = vmatprep.mubr.bf16.mxu1 %v523_v12 }
 0x199   :  { %v378_v18 = vadd.f32 %v377_v17, %v2541_v44  ;;  %v379_v19 = vpop.f32.mrb[39].mxu0  ;;  %856 = vmatmul.mubr.bf16.gmra.mrb[32].mxu1 %v522_v11  ;;  %v478_v21 = vmax.f32 %v374_v14, 0.0 }
 0x19a   :  { %v380_v20 = vadd.f32 %v379_v19, %v2544_v45  ;;  %v479_v23 = vmax.f32 %v376_v16, 0.0 }
 0x19b   :  { %v480_v22 = vmax.f32 %v378_v18, 0.0 }
 0x19c   :  { %v481_v24 = vmax.f32 %v380_v20, 0.0 }
 0x19d   :  { %v524_v25 = vpack.c.bf16 %v480_v22, %v478_v21 }
 0x19e   :  { %v525_v26 = vpack.c.bf16 %v481_v24, %v479_v23  ;;  %v383_v27 = vpop.f32.mrb[40].mxu0 }
 0x19f   :  { %v384_v28 = vadd.f32 %v383_v27, %v2541_v44  ;;  %v385_v29 = vpop.f32.mrb[41].mxu0 }
 0x1a0   :  { %v386_v30 = vadd.f32 %v385_v29, %v2544_v45  ;;  %v387_v31 = vpop.f32.mrb[42].mxu0  ;;  %865 = vmatprep.mubr.bf16.mxu1 %v525_v26 }
 0x1a1   :  { %v388_v32 = vadd.f32 %v387_v31, %v2541_v44  ;;  %v389_v33 = vpop.f32.mrb[43].mxu0  ;;  %866 = vmatmul.mubr.bf16.gmra.mrb[36].mxu1 %v524_v25  ;;  %v482_v35 = vmax.f32 %v384_v28, 0.0 }
 0x1a2   :  { %v390_v34 = vadd.f32 %v389_v33, %v2544_v45  ;;  %v483_v37 = vmax.f32 %v386_v30, 0.0 }
 0x1a3   :  { %v484_v36 = vmax.f32 %v388_v32, 0.0 }
 0x1a4   :  { %v485_v38 = vmax.f32 %v390_v34, 0.0 }
 0x1a5   :  { %v526_v39 = vpack.c.bf16 %v484_v36, %v482_v35 }
 0x1a6   :  { %v527_v0 = vpack.c.bf16 %v485_v38, %v483_v37  ;;  %v393_v42 = vpop.f32.mrb[44].mxu0 }
 0x1a7   :  { %v394_v43 = vadd.f32 %v393_v42, %v2541_v44  ;;  %v395_v46 = vpop.f32.mrb[45].mxu0 }
 0x1a8   :  { %v396_v47 = vadd.f32 %v395_v46, %v2544_v45  ;;  %v397_v48 = vpop.f32.mrb[46].mxu0  ;;  %875 = vmatprep.mubr.bf16.mxu1 %v527_v0 }
 0x1a9   :  { %v398_v49 = vadd.f32 %v397_v48, %v2541_v44  ;;  %v399_v50 = vpop.f32.mrb[47].mxu0  ;;  %876 = vmatmul.mubr.bf16.gmra.mrb[40].mxu1 %v526_v39  ;;  %v486_v52 = vmax.f32 %v394_v43, 0.0 }
 0x1aa   :  { %v400_v51 = vadd.f32 %v399_v50, %v2544_v45  ;;  %v487_v54 = vmax.f32 %v396_v47, 0.0 }
 0x1ab   :  { %v488_v53 = vmax.f32 %v398_v49, 0.0 }
 0x1ac   :  { %v489_v55 = vmax.f32 %v400_v51, 0.0 }
 0x1ad   :  { %v528_v56 = vpack.c.bf16 %v488_v53, %v486_v52 }
 0x1ae   :  { %v529_v57 = vpack.c.bf16 %v489_v55, %v487_v54  ;;  %v403_v58 = vpop.f32.mrb[48].mxu0 }
 0x1af   :  { %v404_v59 = vadd.f32 %v403_v58, %v2541_v44  ;;  %v405_v60 = vpop.f32.mrb[49].mxu0  ;;  %v2230_v58 = vld [vmem:[#allocation10] sm:$0xff]  }
 0x1b0   :  { %v406_v61 = vadd.f32 %v405_v60, %v2544_v45  ;;  %v407_v62 = vpop.f32.mrb[50].mxu0  ;;  %885 = vmatprep.mubr.bf16.mxu1 %v529_v57  ;;  %v2229_v57 = vld [vmem:[#allocation10 + $0x40] sm:$0xff]  }
 0x1b1   :  { %v408_v63 = vadd.f32 %v407_v62, %v2541_v44  ;;  %v409_v1 = vpop.f32.mrb[51].mxu0  ;;  %886 = vmatmul.mubr.bf16.gmra.mrb[44].mxu1 %v528_v56  ;;  %v490_v5 = vmax.f32 %v404_v59, 0.0  ;;  %v1887_v56 = vld [vmem:[%s2813_s5 + $0x1] ss:$4 sm:$0x3]  ;;  %2082 = vmatprep.subr.bf16.mxu1 %v2229_v57 }
 0x1b2   :  { %v410_v3 = vadd.f32 %v409_v1, %v2544_v45  ;;  %v491_v7 = vmax.f32 %v406_v61, 0.0  ;;  %1970 = vmatprep.subr.bf16.mxu0 %v2229_v57  ;;  %2090 = vmatpush3.bf16.msra.mxu1 %v2230_v58 }
 0x1b3   :  { %v492_v6 = vmax.f32 %v408_v63, 0.0 }
 0x1b4   :  { %v493_v8 = vmax.f32 %v410_v3, 0.0  ;;  %v2231_v3 = vld [vmem:[#allocation10 + $0x48] sm:$0xff]  }
 0x1b5   :  { %v530_v9 = vpack.c.bf16 %v492_v6, %v490_v5  ;;  %v2232_v5 = vld [vmem:[#allocation10 + $0x8] sm:$0xff]   ;;  %2083 = vmatprep.subr.bf16.mxu1 %v2231_v3 }
 0x1b6   :  { %v531_v10 = vpack.c.bf16 %v493_v8, %v491_v7  ;;  %v413_v11 = vpop.f32.mrb[52].mxu0  ;;  %v2233_v8 = vld [vmem:[#allocation10 + $0x50] sm:$0xff]   ;;  %2091 = vmatpush3.bf16.msra.mxu1 %v2232_v5 }
 0x1b7   :  { %v414_v12 = vadd.f32 %v413_v11, %v2541_v44  ;;  %v415_v13 = vpop.f32.mrb[53].mxu0  ;;  %2084 = vmatprep.subr.bf16.mxu1 %v2233_v8 }
 0x1b8   :  { %v416_v14 = vadd.f32 %v415_v13, %v2544_v45  ;;  %v417_v15 = vpop.f32.mrb[54].mxu0  ;;  %895 = vmatprep.mubr.bf16.mxu1 %v531_v10 }
 0x1b9   :  { %v418_v16 = vadd.f32 %v417_v15, %v2541_v44  ;;  %v419_v17 = vpop.f32.mrb[55].mxu0  ;;  %896 = vmatmul.mubr.bf16.gmra.mrb[48].mxu1 %v530_v9  ;;  %v494_v19 = vmax.f32 %v414_v12, 0.0 }
 0x1ba   :  { %v420_v18 = vadd.f32 %v419_v17, %v2544_v45  ;;  %v495_v21 = vmax.f32 %v416_v14, 0.0  ;;  %v2234_v14 = vld [vmem:[#allocation10 + $0x10] sm:$0xff]   ;;  %v2235_v17 = vld [vmem:[#allocation10 + $0x58] sm:$0xff]  }
 0x1bb   :  { %v496_v20 = vmax.f32 %v418_v16, 0.0  ;;  %2092 = vmatpush3.bf16.msra.mxu1 %v2234_v14 }
 0x1bc   :  { %v497_v22 = vmax.f32 %v420_v18, 0.0  ;;  %2085 = vmatprep.subr.bf16.mxu1 %v2235_v17 }
 0x1bd   :  { %v532_v23 = vpack.c.bf16 %v496_v20, %v494_v19 }
 0x1be   :  { %v533_v24 = vpack.c.bf16 %v497_v22, %v495_v21  ;;  %v423_v25 = vpop.f32.mrb[56].mxu0 }
 0x1bf   :  { %v424_v26 = vadd.f32 %v423_v25, %v2541_v44  ;;  %v425_v27 = vpop.f32.mrb[57].mxu0 }
 0x1c0   :  { %v426_v28 = vadd.f32 %v425_v27, %v2544_v45  ;;  %v427_v29 = vpop.f32.mrb[58].mxu0  ;;  %905 = vmatprep.mubr.bf16.mxu1 %v533_v24 }
 0x1c1   :  { %v428_v30 = vadd.f32 %v427_v29, %v2541_v44  ;;  %v429_v31 = vpop.f32.mrb[59].mxu0  ;;  %906 = vmatmul.mubr.bf16.gmra.mrb[52].mxu1 %v532_v23  ;;  %v498_v33 = vmax.f32 %v424_v26, 0.0  ;;  %v2236_v23 = vld [vmem:[#allocation10 + $0x18] sm:$0xff]   ;;  %v2237_v26 = vld [vmem:[#allocation10 + $0x60] sm:$0xff]  }
 0x1c2   :  { %v430_v32 = vadd.f32 %v429_v31, %v2544_v45  ;;  %v499_v35 = vmax.f32 %v426_v28, 0.0  ;;  %2093 = vmatpush3.bf16.msra.mxu1 %v2236_v23 }
 0x1c3   :  { %v500_v34 = vmax.f32 %v428_v30, 0.0  ;;  %2086 = vmatprep.subr.bf16.mxu1 %v2237_v26 }
 0x1c4   :  { %v501_v36 = vmax.f32 %v430_v32, 0.0  ;;  %v2238_v32 = vld [vmem:[#allocation10 + $0x20] sm:$0xff]  }
 0x1c5   :  { %v534_v37 = vpack.c.bf16 %v500_v34, %v498_v33 }
 0x1c6   :  { %v535_v38 = vpack.c.bf16 %v501_v36, %v499_v35  ;;  %v433_v39 = vpop.f32.mrb[60].mxu0  ;;  %v2239_v35 = vld [vmem:[#allocation10 + $0x68] sm:$0xff]   ;;  %2094 = vmatpush3.bf16.msra.mxu1 %v2238_v32 }
 0x1c7   :  { %v434_v0 = vadd.f32 %v433_v39, %v2541_v44  ;;  %v435_v42 = vpop.f32.mrb[61].mxu0  ;;  %2087 = vmatprep.subr.bf16.mxu1 %v2239_v35 }
 0x1c8   :  { %v436_v43 = vadd.f32 %v435_v42, %v2544_v45  ;;  %v437_v46 = vpop.f32.mrb[62].mxu0  ;;  %915 = vmatprep.mubr.bf16.mxu1 %v535_v38  ;;  %v2240_v42 = vld [vmem:[#allocation10 + $0x28] sm:$0xff]  }
 0x1c9   :  { %v438_v47 = vadd.f32 %v437_v46, %v2541_v44  ;;  %v439_v48 = vpop.f32.mrb[63].mxu0  ;;  %916 = vmatmul.mubr.bf16.gmra.mrb[56].mxu1 %v534_v37  ;;  %v502_v50 = vmax.f32 %v434_v0, 0.0  ;;  %v2614_v44 = vrot.slane %v1887_v56, %v2533_v40 }
 0x1ca   :  { %v440_v49 = vadd.f32 %v439_v48, %v2544_v45  ;;  %v503_v52 = vmax.f32 %v436_v43, 0.0  ;;  %v2617_v45 = vrot.slane %v1887_v56, %v2538_v41  ;;  %2095 = vmatpush3.bf16.msra.mxu1 %v2240_v42 }
 0x1cb   :  { %v504_v51 = vmax.f32 %v438_v47, 0.0  ;;  %v2241_v47 = vld [vmem:[#allocation10 + $0x70] sm:$0xff]  }
 0x1cc   :  { %v505_v53 = vmax.f32 %v440_v49, 0.0  ;;  %2088 = vmatprep.subr.bf16.mxu1 %v2241_v47 }
 0x1cd   :  { %v536_v54 = vpack.c.bf16 %v504_v51, %v502_v50 }
 0x1ce   :  { %v537_v55 = vpack.c.bf16 %v505_v53, %v503_v52  ;;  %v2242_v53 = vld [vmem:[#allocation10 + $0x30] sm:$0xff]  }
 0x1cf   :  { %2096 = vmatpush3.bf16.msra.mxu1 %v2242_v53 }
 0x1d0   :  { %925 = vmatprep.mubr.bf16.mxu1 %v537_v55 }
 0x1d1   :  { %926 = vmatmul.mubr.bf16.gmra.mrb[60].mxu1 %v536_v54 }
 0x22c   :  { %v777_v59 = vpop.f32.mrb[0].mxu1 }
 0x22d   :  { %v778_v60 = vadd.f32 %v777_v59, %v2614_v44  ;;  %v779_v61 = vpop.f32.mrb[1].mxu1 }
 0x22e   :  { %v780_v62 = vadd.f32 %v779_v61, %v2617_v45  ;;  %v781_v63 = vpop.f32.mrb[2].mxu1 }
 0x22f   :  { %v782_v1 = vadd.f32 %v781_v63, %v2614_v44  ;;  %v783_v2 = vpop.f32.mrb[3].mxu1  ;;  %v936_v6 = vmax.f32 %v778_v60, 0.0 }
 0x230   :  { %v784_v4 = vadd.f32 %v783_v2, %v2617_v45  ;;  %v937_v9 = vmax.f32 %v780_v62, 0.0 }
 0x231   :  { %v938_v7 = vmax.f32 %v782_v1, 0.0 }
 0x232   :  { %v939_v10 = vmax.f32 %v784_v4, 0.0 }
 0x233   :  { %v1000_v11 = vpack.c.bf16 %v938_v7, %v936_v6 }
 0x234   :  { %v1001_v12 = vpack.c.bf16 %v939_v10, %v937_v9  ;;  %v787_v13 = vpop.f32.mrb[4].mxu1 }
 0x235   :  { %v788_v15 = vadd.f32 %v787_v13, %v2614_v44  ;;  %v789_v16 = vpop.f32.mrb[5].mxu1 }
 0x236   :  { %v790_v18 = vadd.f32 %v789_v16, %v2617_v45  ;;  %v791_v19 = vpop.f32.mrb[6].mxu1  ;;  %1269 = vmatprep.mubr.bf16.mxu0 %v1001_v12 }
 0x237   :  { %v792_v20 = vadd.f32 %v791_v19, %v2614_v44  ;;  %v793_v21 = vpop.f32.mrb[7].mxu1  ;;  %1270 = vmatmul.mubr.bf16.vlgmr.msra.gmra.mrb[64].mxu0 %v1000_v11  ;;  %v940_v24 = vmax.f32 %v788_v15, 0.0 }
 0x238   :  { %v794_v22 = vadd.f32 %v793_v21, %v2617_v45  ;;  %1971 = vmatpush3.bf16.msra.mxu0 %v2230_v58  ;;  %v941_v27 = vmax.f32 %v790_v18, 0.0 }
 0x239   :  { %v942_v25 = vmax.f32 %v792_v20, 0.0  ;;  %1972 = vmatprep.subr.bf16.mxu0 %v2231_v3 }
 0x23a   :  { %v943_v28 = vmax.f32 %v794_v22, 0.0 }
 0x23b   :  { %v1002_v29 = vpack.c.bf16 %v942_v25, %v940_v24 }
 0x23c   :  { %v1003_v30 = vpack.c.bf16 %v943_v28, %v941_v27  ;;  %v797_v31 = vpop.f32.mrb[8].mxu1  ;;  %1973 = vmatpush3.bf16.msra.mxu0 %v2232_v5 }
 0x23d   :  { %v798_v33 = vadd.f32 %v797_v31, %v2614_v44  ;;  %v799_v34 = vpop.f32.mrb[9].mxu1  ;;  %1974 = vmatprep.subr.bf16.mxu0 %v2233_v8 }
 0x23e   :  { %v800_v36 = vadd.f32 %v799_v34, %v2617_v45  ;;  %v801_v37 = vpop.f32.mrb[10].mxu1  ;;  %1279 = vmatprep.mubr.bf16.mxu0 %v1003_v30 }
 0x23f   :  { %v802_v38 = vadd.f32 %v801_v37, %v2614_v44  ;;  %v803_v39 = vpop.f32.mrb[11].mxu1  ;;  %1280 = vmatmul.mubr.bf16.gmra.mrb[68].mxu0 %v1002_v29  ;;  %v944_v43 = vmax.f32 %v798_v33, 0.0 }
 0x240   :  { %v804_v0 = vadd.f32 %v803_v39, %v2617_v45  ;;  %1975 = vmatpush3.bf16.msra.mxu0 %v2234_v14  ;;  %v945_v48 = vmax.f32 %v800_v36, 0.0 }
 0x241   :  { %v946_v46 = vmax.f32 %v802_v38, 0.0  ;;  %1976 = vmatprep.subr.bf16.mxu0 %v2235_v17 }
 0x242   :  { %v947_v49 = vmax.f32 %v804_v0, 0.0 }
 0x243   :  { %v1004_v50 = vpack.c.bf16 %v946_v46, %v944_v43 }
 0x244   :  { %v1005_v51 = vpack.c.bf16 %v947_v49, %v945_v48  ;;  %v807_v52 = vpop.f32.mrb[12].mxu1  ;;  %1977 = vmatpush3.bf16.msra.mxu0 %v2236_v23 }
 0x245   :  { %v808_v54 = vadd.f32 %v807_v52, %v2614_v44  ;;  %v809_v55 = vpop.f32.mrb[13].mxu1  ;;  %1978 = vmatprep.subr.bf16.mxu0 %v2237_v26 }
 0x246   :  { %v810_v56 = vadd.f32 %v809_v55, %v2617_v45  ;;  %v811_v57 = vpop.f32.mrb[14].mxu1  ;;  %1289 = vmatprep.mubr.bf16.mxu0 %v1005_v51 }
 0x247   :  { %v812_v58 = vadd.f32 %v811_v57, %v2614_v44  ;;  %v813_v59 = vpop.f32.mrb[15].mxu1  ;;  %1290 = vmatmul.mubr.bf16.gmra.mrb[72].mxu0 %v1004_v50  ;;  %v948_v61 = vmax.f32 %v808_v54, 0.0 }
 0x248   :  { %v814_v60 = vadd.f32 %v813_v59, %v2617_v45  ;;  %1979 = vmatpush3.bf16.msra.mxu0 %v2238_v32  ;;  %v949_v63 = vmax.f32 %v810_v56, 0.0 }
 0x249   :  { %v950_v62 = vmax.f32 %v812_v58, 0.0  ;;  %1980 = vmatprep.subr.bf16.mxu0 %v2239_v35 }
 0x24a   :  { %v951_v1 = vmax.f32 %v814_v60, 0.0 }
 0x24b   :  { %v1006_v2 = vpack.c.bf16 %v950_v62, %v948_v61 }
 0x24c   :  { %v1007_v3 = vpack.c.bf16 %v951_v1, %v949_v63  ;;  %v817_v4 = vpop.f32.mrb[16].mxu1  ;;  %1981 = vmatpush3.bf16.msra.mxu0 %v2240_v42 }
 0x24d   :  { %v818_v5 = vadd.f32 %v817_v4, %v2614_v44  ;;  %v819_v6 = vpop.f32.mrb[17].mxu1  ;;  %1982 = vmatprep.subr.bf16.mxu0 %v2241_v47 }
 0x24e   :  { %v820_v7 = vadd.f32 %v819_v6, %v2617_v45  ;;  %v821_v8 = vpop.f32.mrb[18].mxu1  ;;  %1299 = vmatprep.mubr.bf16.mxu0 %v1007_v3 }
 0x24f   :  { %v822_v9 = vadd.f32 %v821_v8, %v2614_v44  ;;  %v823_v10 = vpop.f32.mrb[19].mxu1  ;;  %1300 = vmatmul.mubr.bf16.gmra.mrb[76].mxu0 %v1006_v2  ;;  %v952_v12 = vmax.f32 %v818_v5, 0.0 }
 0x250   :  { %v824_v11 = vadd.f32 %v823_v10, %v2617_v45  ;;  %1983 = vmatpush3.bf16.msra.mxu0 %v2242_v53  ;;  %v953_v14 = vmax.f32 %v820_v7, 0.0 }
 0x251   :  { %v954_v13 = vmax.f32 %v822_v9, 0.0 }
 0x252   :  { %v955_v15 = vmax.f32 %v824_v11, 0.0 }
 0x253   :  { %v1008_v16 = vpack.c.bf16 %v954_v13, %v952_v12 }
 0x254   :  { %v1009_v17 = vpack.c.bf16 %v955_v15, %v953_v14  ;;  %v827_v18 = vpop.f32.mrb[20].mxu1 }
 0x255   :  { %v828_v19 = vadd.f32 %v827_v18, %v2614_v44  ;;  %v829_v20 = vpop.f32.mrb[21].mxu1 }
 0x256   :  { %v830_v21 = vadd.f32 %v829_v20, %v2617_v45  ;;  %v831_v22 = vpop.f32.mrb[22].mxu1  ;;  %1309 = vmatprep.mubr.bf16.mxu0 %v1009_v17 }
 0x257   :  { %v832_v23 = vadd.f32 %v831_v22, %v2614_v44  ;;  %v833_v24 = vpop.f32.mrb[23].mxu1  ;;  %1310 = vmatmul.mubr.bf16.gmra.mrb[80].mxu0 %v1008_v16  ;;  %v956_v26 = vmax.f32 %v828_v19, 0.0 }
 0x258   :  { %v834_v25 = vadd.f32 %v833_v24, %v2617_v45  ;;  %v957_v28 = vmax.f32 %v830_v21, 0.0 }
 0x259   :  { %v958_v27 = vmax.f32 %v832_v23, 0.0 }
 0x25a   :  { %v959_v29 = vmax.f32 %v834_v25, 0.0 }
 0x25b   :  { %v1010_v30 = vpack.c.bf16 %v958_v27, %v956_v26 }
 0x25c   :  { %v1011_v31 = vpack.c.bf16 %v959_v29, %v957_v28  ;;  %v837_v32 = vpop.f32.mrb[24].mxu1 }
 0x25d   :  { %v838_v33 = vadd.f32 %v837_v32, %v2614_v44  ;;  %v839_v34 = vpop.f32.mrb[25].mxu1 }
 0x25e   :  { %v840_v35 = vadd.f32 %v839_v34, %v2617_v45  ;;  %v841_v36 = vpop.f32.mrb[26].mxu1  ;;  %1319 = vmatprep.mubr.bf16.mxu0 %v1011_v31 }
 0x25f   :  { %v842_v37 = vadd.f32 %v841_v36, %v2614_v44  ;;  %v843_v38 = vpop.f32.mrb[27].mxu1  ;;  %1320 = vmatmul.mubr.bf16.gmra.mrb[84].mxu0 %v1010_v30  ;;  %v960_v0 = vmax.f32 %v838_v33, 0.0 }
 0x260   :  { %v844_v39 = vadd.f32 %v843_v38, %v2617_v45  ;;  %v961_v43 = vmax.f32 %v840_v35, 0.0 }
 0x261   :  { %v962_v42 = vmax.f32 %v842_v37, 0.0 }
 0x262   :  { %v963_v46 = vmax.f32 %v844_v39, 0.0 }
 0x263   :  { %v1012_v47 = vpack.c.bf16 %v962_v42, %v960_v0 }
 0x264   :  { %v1013_v48 = vpack.c.bf16 %v963_v46, %v961_v43  ;;  %v847_v49 = vpop.f32.mrb[28].mxu1 }
 0x265   :  { %v848_v50 = vadd.f32 %v847_v49, %v2614_v44  ;;  %v849_v51 = vpop.f32.mrb[29].mxu1 }
 0x266   :  { %v850_v52 = vadd.f32 %v849_v51, %v2617_v45  ;;  %v851_v53 = vpop.f32.mrb[30].mxu1  ;;  %1329 = vmatprep.mubr.bf16.mxu0 %v1013_v48 }
 0x267   :  { %v852_v54 = vadd.f32 %v851_v53, %v2614_v44  ;;  %v853_v55 = vpop.f32.mrb[31].mxu1  ;;  %1330 = vmatmul.mubr.bf16.gmra.mrb[88].mxu0 %v1012_v47  ;;  %v964_v57 = vmax.f32 %v848_v50, 0.0 }
 0x268   :  { %v854_v56 = vadd.f32 %v853_v55, %v2617_v45  ;;  %v965_v59 = vmax.f32 %v850_v52, 0.0 }
 0x269   :  { %v966_v58 = vmax.f32 %v852_v54, 0.0 }
 0x26a   :  { %v967_v60 = vmax.f32 %v854_v56, 0.0 }
 0x26b   :  { %v1014_v61 = vpack.c.bf16 %v966_v58, %v964_v57 }
 0x26c   :  { %v1015_v62 = vpack.c.bf16 %v967_v60, %v965_v59  ;;  %v857_v63 = vpop.f32.mrb[32].mxu1 }
 0x26d   :  { %v858_v1 = vadd.f32 %v857_v63, %v2614_v44  ;;  %v859_v2 = vpop.f32.mrb[33].mxu1 }
 0x26e   :  { %v860_v3 = vadd.f32 %v859_v2, %v2617_v45  ;;  %v861_v4 = vpop.f32.mrb[34].mxu1  ;;  %1339 = vmatprep.mubr.bf16.mxu0 %v1015_v62 }
 0x26f   :  { %v862_v5 = vadd.f32 %v861_v4, %v2614_v44  ;;  %v863_v6 = vpop.f32.mrb[35].mxu1  ;;  %1340 = vmatmul.mubr.bf16.gmra.mrb[92].mxu0 %v1014_v61  ;;  %v968_v8 = vmax.f32 %v858_v1, 0.0 }
 0x270   :  { %v864_v7 = vadd.f32 %v863_v6, %v2617_v45  ;;  %v969_v10 = vmax.f32 %v860_v3, 0.0  ;;  %v2243_v3 = vld [vmem:[#allocation10 + $0x78] sm:$0xff]  }
 0x271   :  { %v970_v9 = vmax.f32 %v862_v5, 0.0  ;;  %v2244_v5 = vld [vmem:[#allocation10 + $0x38] sm:$0xff]   ;;  %1984 = vmatprep.subr.bf16.mxu0 %v2243_v3  ;;  %2089 = vmatprep.subr.bf16.mxu1 %v2243_v3 }
 0x272   :  { %v971_v11 = vmax.f32 %v864_v7, 0.0  ;;  %1985 = vmatpush3.bf16.msra.mxu0 %v2244_v5  ;;  %2097 = vmatpush3.bf16.msra.mxu1 %v2244_v5 }
 0x273   :  { %v1016_v12 = vpack.c.bf16 %v970_v9, %v968_v8 }
 0x274   :  { %v1017_v13 = vpack.c.bf16 %v971_v11, %v969_v10  ;;  %v867_v14 = vpop.f32.mrb[36].mxu1 }
 0x275   :  { %v868_v15 = vadd.f32 %v867_v14, %v2614_v44  ;;  %v869_v16 = vpop.f32.mrb[37].mxu1 }
 0x276   :  { %v870_v17 = vadd.f32 %v869_v16, %v2617_v45  ;;  %v871_v18 = vpop.f32.mrb[38].mxu1  ;;  %1349 = vmatprep.mubr.bf16.mxu0 %v1017_v13 }
 0x277   :  { %v872_v19 = vadd.f32 %v871_v18, %v2614_v44  ;;  %v873_v20 = vpop.f32.mrb[39].mxu1  ;;  %1350 = vmatmul.mubr.bf16.gmra.mrb[96].mxu0 %v1016_v12  ;;  %v972_v22 = vmax.f32 %v868_v15, 0.0 }
 0x278   :  { %v874_v21 = vadd.f32 %v873_v20, %v2617_v45  ;;  %v973_v24 = vmax.f32 %v870_v17, 0.0 }
 0x279   :  { %v974_v23 = vmax.f32 %v872_v19, 0.0 }
 0x27a   :  { %v975_v25 = vmax.f32 %v874_v21, 0.0 }
 0x27b   :  { %v1018_v26 = vpack.c.bf16 %v974_v23, %v972_v22 }
 0x27c   :  { %v1019_v27 = vpack.c.bf16 %v975_v25, %v973_v24  ;;  %v877_v28 = vpop.f32.mrb[40].mxu1 }
 0x27d   :  { %v878_v29 = vadd.f32 %v877_v28, %v2614_v44  ;;  %v879_v30 = vpop.f32.mrb[41].mxu1 }
 0x27e   :  { %v880_v31 = vadd.f32 %v879_v30, %v2617_v45  ;;  %v881_v32 = vpop.f32.mrb[42].mxu1  ;;  %1359 = vmatprep.mubr.bf16.mxu0 %v1019_v27 }
 0x27f   :  { %v882_v33 = vadd.f32 %v881_v32, %v2614_v44  ;;  %v883_v34 = vpop.f32.mrb[43].mxu1  ;;  %1360 = vmatmul.mubr.bf16.gmra.mrb[100].mxu0 %v1018_v26  ;;  %v976_v36 = vmax.f32 %v878_v29, 0.0 }
 0x280   :  { %v884_v35 = vadd.f32 %v883_v34, %v2617_v45  ;;  %v977_v38 = vmax.f32 %v880_v31, 0.0 }
 0x281   :  { %v978_v37 = vmax.f32 %v882_v33, 0.0 }
 0x282   :  { %v979_v39 = vmax.f32 %v884_v35, 0.0 }
 0x283   :  { %v1020_v0 = vpack.c.bf16 %v978_v37, %v976_v36 }
 0x284   :  { %v1021_v42 = vpack.c.bf16 %v979_v39, %v977_v38  ;;  %v887_v43 = vpop.f32.mrb[44].mxu1 }
 0x285   :  { %v888_v46 = vadd.f32 %v887_v43, %v2614_v44  ;;  %v889_v47 = vpop.f32.mrb[45].mxu1 }
 0x286   :  { %v890_v48 = vadd.f32 %v889_v47, %v2617_v45  ;;  %v891_v49 = vpop.f32.mrb[46].mxu1  ;;  %1369 = vmatprep.mubr.bf16.mxu0 %v1021_v42 }
 0x287   :  { %v892_v50 = vadd.f32 %v891_v49, %v2614_v44  ;;  %v893_v51 = vpop.f32.mrb[47].mxu1  ;;  %1370 = vmatmul.mubr.bf16.gmra.mrb[104].mxu0 %v1020_v0  ;;  %v980_v53 = vmax.f32 %v888_v46, 0.0 }
 0x288   :  { %v894_v52 = vadd.f32 %v893_v51, %v2617_v45  ;;  %v981_v55 = vmax.f32 %v890_v48, 0.0 }
 0x289   :  { %v982_v54 = vmax.f32 %v892_v50, 0.0 }
 0x28a   :  { %v983_v56 = vmax.f32 %v894_v52, 0.0 }
 0x28b   :  { %v1022_v57 = vpack.c.bf16 %v982_v54, %v980_v53 }
 0x28c   :  { %v1023_v58 = vpack.c.bf16 %v983_v56, %v981_v55  ;;  %v897_v59 = vpop.f32.mrb[48].mxu1 }
 0x28d   :  { %v898_v60 = vadd.f32 %v897_v59, %v2614_v44  ;;  %v899_v61 = vpop.f32.mrb[49].mxu1 }
 0x28e   :  { %v900_v62 = vadd.f32 %v899_v61, %v2617_v45  ;;  %v901_v63 = vpop.f32.mrb[50].mxu1  ;;  %1379 = vmatprep.mubr.bf16.mxu0 %v1023_v58 }
 0x28f   :  { %v902_v1 = vadd.f32 %v901_v63, %v2614_v44  ;;  %v903_v2 = vpop.f32.mrb[51].mxu1  ;;  %1380 = vmatmul.mubr.bf16.gmra.mrb[108].mxu0 %v1022_v57  ;;  %v984_v6 = vmax.f32 %v898_v60, 0.0  ;;  %v1920_v57 = vld [vmem:[%s2813_s5 + $0x2] ss:$4 sm:$0x3] }
 0x290   :  { %v904_v4 = vadd.f32 %v903_v2, %v2617_v45  ;;  %v985_v8 = vmax.f32 %v900_v62, 0.0  ;;  %v2687_v58 = vrot.slane %v1920_v57, %v2533_v40 }
 0x291   :  { %v986_v7 = vmax.f32 %v902_v1, 0.0 }
 0x292   :  { %v987_v9 = vmax.f32 %v904_v4, 0.0 }
 0x293   :  { %v1024_v10 = vpack.c.bf16 %v986_v7, %v984_v6 }
 0x294   :  { %v1025_v11 = vpack.c.bf16 %v987_v9, %v985_v8  ;;  %v907_v12 = vpop.f32.mrb[52].mxu1 }
 0x295   :  { %v908_v13 = vadd.f32 %v907_v12, %v2614_v44  ;;  %v909_v14 = vpop.f32.mrb[53].mxu1 }
 0x296   :  { %v910_v15 = vadd.f32 %v909_v14, %v2617_v45  ;;  %v911_v16 = vpop.f32.mrb[54].mxu1  ;;  %1389 = vmatprep.mubr.bf16.mxu0 %v1025_v11 }
 0x297   :  { %v912_v17 = vadd.f32 %v911_v16, %v2614_v44  ;;  %v913_v18 = vpop.f32.mrb[55].mxu1  ;;  %1390 = vmatmul.mubr.bf16.gmra.mrb[112].mxu0 %v1024_v10  ;;  %v988_v20 = vmax.f32 %v908_v13, 0.0 }
 0x298   :  { %v914_v19 = vadd.f32 %v913_v18, %v2617_v45  ;;  %v989_v22 = vmax.f32 %v910_v15, 0.0 }
 0x299   :  { %v990_v21 = vmax.f32 %v912_v17, 0.0 }
 0x29a   :  { %v991_v23 = vmax.f32 %v914_v19, 0.0 }
 0x29b   :  { %v1026_v24 = vpack.c.bf16 %v990_v21, %v988_v20 }
 0x29c   :  { %v1027_v25 = vpack.c.bf16 %v991_v23, %v989_v22  ;;  %v917_v26 = vpop.f32.mrb[56].mxu1 }
 0x29d   :  { %v918_v27 = vadd.f32 %v917_v26, %v2614_v44  ;;  %v919_v28 = vpop.f32.mrb[57].mxu1 }
 0x29e   :  { %v920_v29 = vadd.f32 %v919_v28, %v2617_v45  ;;  %v921_v30 = vpop.f32.mrb[58].mxu1  ;;  %1399 = vmatprep.mubr.bf16.mxu0 %v1027_v25 }
 0x29f   :  { %v922_v31 = vadd.f32 %v921_v30, %v2614_v44  ;;  %v923_v32 = vpop.f32.mrb[59].mxu1  ;;  %1400 = vmatmul.mubr.bf16.gmra.mrb[116].mxu0 %v1026_v24  ;;  %v992_v34 = vmax.f32 %v918_v27, 0.0 }
 0x2a0   :  { %v924_v33 = vadd.f32 %v923_v32, %v2617_v45  ;;  %v993_v36 = vmax.f32 %v920_v29, 0.0 }
 0x2a1   :  { %v994_v35 = vmax.f32 %v922_v31, 0.0 }
 0x2a2   :  { %v995_v37 = vmax.f32 %v924_v33, 0.0 }
 0x2a3   :  { %v1028_v38 = vpack.c.bf16 %v994_v35, %v992_v34 }
 0x2a4   :  { %v1029_v39 = vpack.c.bf16 %v995_v37, %v993_v36  ;;  %v927_v0 = vpop.f32.mrb[60].mxu1 }
 0x2a5   :  { %v928_v42 = vadd.f32 %v927_v0, %v2614_v44  ;;  %v929_v43 = vpop.f32.mrb[61].mxu1 }
 0x2a6   :  { %v930_v46 = vadd.f32 %v929_v43, %v2617_v45  ;;  %v931_v47 = vpop.f32.mrb[62].mxu1  ;;  %1409 = vmatprep.mubr.bf16.mxu0 %v1029_v39 }
 0x2a7   :  { %v932_v48 = vadd.f32 %v931_v47, %v2614_v44  ;;  %v933_v49 = vpop.f32.mrb[63].mxu1  ;;  %1410 = vmatmul.mubr.bf16.gmra.mrb[120].mxu0 %v1028_v38  ;;  %v996_v51 = vmax.f32 %v928_v42, 0.0  ;;  %v2690_v44 = vrot.slane %v1920_v57, %v2538_v41 }
 0x2a8   :  { %v934_v50 = vadd.f32 %v933_v49, %v2617_v45  ;;  %v997_v53 = vmax.f32 %v930_v46, 0.0 }
 0x2a9   :  { %v998_v52 = vmax.f32 %v932_v48, 0.0 }
 0x2aa   :  { %v999_v54 = vmax.f32 %v934_v50, 0.0 }
 0x2ab   :  { %v1030_v55 = vpack.c.bf16 %v998_v52, %v996_v51 }
 0x2ac   :  { %v1031_v56 = vpack.c.bf16 %v999_v54, %v997_v53 }
 0x2ae   :  { %1419 = vmatprep.mubr.bf16.mxu0 %v1031_v56 }
 0x2af   :  { %1420 = vmatmul.mubr.bf16.gmra.mrb[124].mxu0 %v1030_v55 }
 0x30a   :  { %v1271_v59 = vpop.f32.mrb[64].mxu0 }
 0x30b   :  { %v1272_v45 = vadd.f32 %v1271_v59, %v2687_v58  ;;  %v1273_v60 = vpop.f32.mrb[65].mxu0 }
 0x30c   :  { %v1274_v61 = vadd.f32 %v1273_v60, %v2690_v44  ;;  %v1275_v62 = vpop.f32.mrb[66].mxu0 }
 0x30d   :  { %v1276_v63 = vadd.f32 %v1275_v62, %v2687_v58  ;;  %v1277_v1 = vpop.f32.mrb[67].mxu0  ;;  %v1430_v3 = vmax.f32 %v1272_v45, 0.0 }
 0x30e   :  { %v1278_v2 = vadd.f32 %v1277_v1, %v2690_v44  ;;  %v1431_v5 = vmax.f32 %v1274_v61, 0.0 }
 0x30f   :  { %v1432_v4 = vmax.f32 %v1276_v63, 0.0 }
 0x310   :  { %v1433_v40 = vmax.f32 %v1278_v2, 0.0 }
 0x311   :  { %v1494_v6 = vpack.c.bf16 %v1432_v4, %v1430_v3 }
 0x312   :  { %v1495_v7 = vpack.c.bf16 %v1433_v40, %v1431_v5  ;;  %v1281_v41 = vpop.f32.mrb[68].mxu0 }
 0x313   :  { %v1282_v8 = vadd.f32 %v1281_v41, %v2687_v58  ;;  %v1283_v9 = vpop.f32.mrb[69].mxu0 }
 0x314   :  { %v1284_v10 = vadd.f32 %v1283_v9, %v2690_v44  ;;  %v1285_v11 = vpop.f32.mrb[70].mxu0  ;;  %1691 = vmatprep.mubr.bf16.mxu0 %v1495_v7 }
 0x315   :  { %v1286_v12 = vadd.f32 %v1285_v11, %v2687_v58  ;;  %v1287_v13 = vpop.f32.mrb[71].mxu0  ;;  %1692 = vmatmul.mubr.bf16.vlgmr.msra.gmra.mrb[128].mxu0 %v1494_v6  ;;  %v1434_v15 = vmax.f32 %v1282_v8, 0.0 }
 0x316   :  { %v1288_v14 = vadd.f32 %v1287_v13, %v2690_v44  ;;  %v1435_v17 = vmax.f32 %v1284_v10, 0.0 }
 0x317   :  { %v1436_v16 = vmax.f32 %v1286_v12, 0.0 }
 0x318   :  { %v1437_v18 = vmax.f32 %v1288_v14, 0.0 }
 0x319   :  { %v1496_v19 = vpack.c.bf16 %v1436_v16, %v1434_v15 }
 0x31a   :  { %v1497_v20 = vpack.c.bf16 %v1437_v18, %v1435_v17  ;;  %v1291_v21 = vpop.f32.mrb[72].mxu0 }
 0x31b   :  { %v1292_v22 = vadd.f32 %v1291_v21, %v2687_v58  ;;  %v1293_v23 = vpop.f32.mrb[73].mxu0 }
 0x31c   :  { %v1294_v24 = vadd.f32 %v1293_v23, %v2690_v44  ;;  %v1295_v25 = vpop.f32.mrb[74].mxu0  ;;  %1699 = vmatprep.mubr.bf16.mxu0 %v1497_v20 }
 0x31d   :  { %v1296_v26 = vadd.f32 %v1295_v25, %v2687_v58  ;;  %v1297_v27 = vpop.f32.mrb[75].mxu0  ;;  %1700 = vmatmul.mubr.bf16.gmra.mrb[132].mxu0 %v1496_v19  ;;  %v1438_v29 = vmax.f32 %v1292_v22, 0.0 }
 0x31e   :  { %v1298_v28 = vadd.f32 %v1297_v27, %v2690_v44  ;;  %v1439_v31 = vmax.f32 %v1294_v24, 0.0 }
 0x31f   :  { %v1440_v30 = vmax.f32 %v1296_v26, 0.0 }
 0x320   :  { %v1441_v32 = vmax.f32 %v1298_v28, 0.0 }
 0x321   :  { %v1498_v33 = vpack.c.bf16 %v1440_v30, %v1438_v29 }
 0x322   :  { %v1499_v34 = vpack.c.bf16 %v1441_v32, %v1439_v31  ;;  %v1301_v35 = vpop.f32.mrb[76].mxu0 }
 0x323   :  { %v1302_v36 = vadd.f32 %v1301_v35, %v2687_v58  ;;  %v1303_v37 = vpop.f32.mrb[77].mxu0 }
 0x324   :  { %v1304_v38 = vadd.f32 %v1303_v37, %v2690_v44  ;;  %v1305_v39 = vpop.f32.mrb[78].mxu0  ;;  %1707 = vmatprep.mubr.bf16.mxu1 %v1499_v34 }
 0x325   :  { %v1306_v0 = vadd.f32 %v1305_v39, %v2687_v58  ;;  %v1307_v42 = vpop.f32.mrb[79].mxu0  ;;  %1708 = vmatmul.mubr.bf16.vlgmr.msra.gmra.mrb[64].mxu1 %v1498_v33  ;;  %v1442_v46 = vmax.f32 %v1302_v36, 0.0 }
 0x326   :  { %v1308_v43 = vadd.f32 %v1307_v42, %v2690_v44  ;;  %v1443_v48 = vmax.f32 %v1304_v38, 0.0 }
 0x327   :  { %v1444_v47 = vmax.f32 %v1306_v0, 0.0 }
 0x328   :  { %v1445_v49 = vmax.f32 %v1308_v43, 0.0 }
 0x329   :  { %v1500_v50 = vpack.c.bf16 %v1444_v47, %v1442_v46 }
 0x32a   :  { %v1501_v51 = vpack.c.bf16 %v1445_v49, %v1443_v48  ;;  %v1311_v52 = vpop.f32.mrb[80].mxu0 }
 0x32b   :  { %v1312_v53 = vadd.f32 %v1311_v52, %v2687_v58  ;;  %v1313_v54 = vpop.f32.mrb[81].mxu0 }
 0x32c   :  { %v1314_v55 = vadd.f32 %v1313_v54, %v2690_v44  ;;  %v1315_v56 = vpop.f32.mrb[82].mxu0  ;;  %1715 = vmatprep.mubr.bf16.mxu1 %v1501_v51 }
 0x32d   :  { %v1316_v57 = vadd.f32 %v1315_v56, %v2687_v58  ;;  %v1317_v59 = vpop.f32.mrb[83].mxu0  ;;  %1716 = vmatmul.mubr.bf16.gmra.mrb[68].mxu1 %v1500_v50  ;;  %v1446_v60 = vmax.f32 %v1312_v53, 0.0 }
 0x32e   :  { %v1318_v45 = vadd.f32 %v1317_v59, %v2690_v44  ;;  %v1447_v62 = vmax.f32 %v1314_v55, 0.0 }
 0x32f   :  { %v1448_v61 = vmax.f32 %v1316_v57, 0.0 }
 0x330   :  { %v1449_v63 = vmax.f32 %v1318_v45, 0.0 }
 0x331   :  { %v1502_v1 = vpack.c.bf16 %v1448_v61, %v1446_v60 }
 0x332   :  { %v1503_v2 = vpack.c.bf16 %v1449_v63, %v1447_v62  ;;  %v1321_v3 = vpop.f32.mrb[84].mxu0 }
 0x333   :  { %v1322_v4 = vadd.f32 %v1321_v3, %v2687_v58  ;;  %v1323_v5 = vpop.f32.mrb[85].mxu0 }
 0x334   :  { %v1324_v40 = vadd.f32 %v1323_v5, %v2690_v44  ;;  %v1325_v6 = vpop.f32.mrb[86].mxu0  ;;  %1723 = vmatprep.mubr.bf16.mxu1 %v1503_v2 }
 0x335   :  { %v1326_v7 = vadd.f32 %v1325_v6, %v2687_v58  ;;  %v1327_v41 = vpop.f32.mrb[87].mxu0  ;;  %1724 = vmatmul.mubr.bf16.gmra.mrb[72].mxu1 %v1502_v1  ;;  %v1450_v9 = vmax.f32 %v1322_v4, 0.0 }
 0x336   :  { %v1328_v8 = vadd.f32 %v1327_v41, %v2690_v44  ;;  %v1451_v11 = vmax.f32 %v1324_v40, 0.0 }
 0x337   :  { %v1452_v10 = vmax.f32 %v1326_v7, 0.0 }
 0x338   :  { %v1453_v12 = vmax.f32 %v1328_v8, 0.0 }
 0x339   :  { %v1504_v13 = vpack.c.bf16 %v1452_v10, %v1450_v9 }
 0x33a   :  { %v1505_v14 = vpack.c.bf16 %v1453_v12, %v1451_v11  ;;  %v1331_v15 = vpop.f32.mrb[88].mxu0 }
 0x33b   :  { %v1332_v16 = vadd.f32 %v1331_v15, %v2687_v58  ;;  %v1333_v17 = vpop.f32.mrb[89].mxu0 }
 0x33c   :  { %v1334_v18 = vadd.f32 %v1333_v17, %v2690_v44  ;;  %v1335_v19 = vpop.f32.mrb[90].mxu0  ;;  %1731 = vmatprep.mubr.bf16.mxu1 %v1505_v14 }
 0x33d   :  { %v1336_v20 = vadd.f32 %v1335_v19, %v2687_v58  ;;  %v1337_v21 = vpop.f32.mrb[91].mxu0  ;;  %1732 = vmatmul.mubr.bf16.gmra.mrb[76].mxu1 %v1504_v13  ;;  %v1454_v23 = vmax.f32 %v1332_v16, 0.0 }
 0x33e   :  { %v1338_v22 = vadd.f32 %v1337_v21, %v2690_v44  ;;  %v1455_v25 = vmax.f32 %v1334_v18, 0.0 }
 0x33f   :  { %v1456_v24 = vmax.f32 %v1336_v20, 0.0 }
 0x340   :  { %v1457_v26 = vmax.f32 %v1338_v22, 0.0 }
 0x341   :  { %v1506_v27 = vpack.c.bf16 %v1456_v24, %v1454_v23 }
 0x342   :  { %v1507_v28 = vpack.c.bf16 %v1457_v26, %v1455_v25  ;;  %v1341_v29 = vpop.f32.mrb[92].mxu0 }
 0x343   :  { %v1342_v30 = vadd.f32 %v1341_v29, %v2687_v58  ;;  %v1343_v31 = vpop.f32.mrb[93].mxu0 }
 0x344   :  { %v1344_v32 = vadd.f32 %v1343_v31, %v2690_v44  ;;  %v1345_v33 = vpop.f32.mrb[94].mxu0  ;;  %1739 = vmatprep.mubr.bf16.mxu1 %v1507_v28 }
 0x345   :  { %v1346_v34 = vadd.f32 %v1345_v33, %v2687_v58  ;;  %v1347_v35 = vpop.f32.mrb[95].mxu0  ;;  %1740 = vmatmul.mubr.bf16.gmra.mrb[80].mxu1 %v1506_v27  ;;  %v1458_v37 = vmax.f32 %v1342_v30, 0.0 }
 0x346   :  { %v1348_v36 = vadd.f32 %v1347_v35, %v2690_v44  ;;  %v1459_v39 = vmax.f32 %v1344_v32, 0.0 }
 0x347   :  { %v1460_v38 = vmax.f32 %v1346_v34, 0.0 }
 0x348   :  { %v1461_v0 = vmax.f32 %v1348_v36, 0.0 }
 0x349   :  { %v1508_v42 = vpack.c.bf16 %v1460_v38, %v1458_v37 }
 0x34a   :  { %v1509_v43 = vpack.c.bf16 %v1461_v0, %v1459_v39  ;;  %v1351_v46 = vpop.f32.mrb[96].mxu0 }
 0x34b   :  { %v1352_v47 = vadd.f32 %v1351_v46, %v2687_v58  ;;  %v1353_v48 = vpop.f32.mrb[97].mxu0 }
 0x34c   :  { %v1354_v49 = vadd.f32 %v1353_v48, %v2690_v44  ;;  %v1355_v50 = vpop.f32.mrb[98].mxu0  ;;  %1747 = vmatprep.mubr.bf16.mxu1 %v1509_v43 }
 0x34d   :  { %v1356_v51 = vadd.f32 %v1355_v50, %v2687_v58  ;;  %v1357_v52 = vpop.f32.mrb[99].mxu0  ;;  %1748 = vmatmul.mubr.bf16.gmra.mrb[84].mxu1 %v1508_v42  ;;  %v1462_v54 = vmax.f32 %v1352_v47, 0.0 }
 0x34e   :  { %v1358_v53 = vadd.f32 %v1357_v52, %v2690_v44  ;;  %v1463_v56 = vmax.f32 %v1354_v49, 0.0 }
 0x34f   :  { %v1464_v55 = vmax.f32 %v1356_v51, 0.0 }
 0x350   :  { %v1465_v57 = vmax.f32 %v1358_v53, 0.0 }
 0x351   :  { %v1510_v59 = vpack.c.bf16 %v1464_v55, %v1462_v54 }
 0x352   :  { %v1511_v45 = vpack.c.bf16 %v1465_v57, %v1463_v56  ;;  %v1361_v60 = vpop.f32.mrb[100].mxu0 }
 0x353   :  { %v1362_v61 = vadd.f32 %v1361_v60, %v2687_v58  ;;  %v1363_v62 = vpop.f32.mrb[101].mxu0 }
 0x354   :  { %v1364_v63 = vadd.f32 %v1363_v62, %v2690_v44  ;;  %v1365_v1 = vpop.f32.mrb[102].mxu0  ;;  %1755 = vmatprep.mubr.bf16.mxu1 %v1511_v45 }
 0x355   :  { %v1366_v2 = vadd.f32 %v1365_v1, %v2687_v58  ;;  %v1367_v3 = vpop.f32.mrb[103].mxu0  ;;  %1756 = vmatmul.mubr.bf16.gmra.mrb[88].mxu1 %v1510_v59  ;;  %v1466_v5 = vmax.f32 %v1362_v61, 0.0 }
 0x356   :  { %v1368_v4 = vadd.f32 %v1367_v3, %v2690_v44  ;;  %v1467_v6 = vmax.f32 %v1364_v63, 0.0 }
 0x357   :  { %v1468_v40 = vmax.f32 %v1366_v2, 0.0 }
 0x358   :  { %v1469_v7 = vmax.f32 %v1368_v4, 0.0 }
 0x359   :  { %v1512_v41 = vpack.c.bf16 %v1468_v40, %v1466_v5 }
 0x35a   :  { %v1513_v8 = vpack.c.bf16 %v1469_v7, %v1467_v6  ;;  %v1371_v9 = vpop.f32.mrb[104].mxu0 }
 0x35b   :  { %v1372_v10 = vadd.f32 %v1371_v9, %v2687_v58  ;;  %v1373_v11 = vpop.f32.mrb[105].mxu0 }
 0x35c   :  { %v1374_v12 = vadd.f32 %v1373_v11, %v2690_v44  ;;  %v1375_v13 = vpop.f32.mrb[106].mxu0  ;;  %1763 = vmatprep.mubr.bf16.mxu1 %v1513_v8 }
 0x35d   :  { %v1376_v14 = vadd.f32 %v1375_v13, %v2687_v58  ;;  %v1377_v15 = vpop.f32.mrb[107].mxu0  ;;  %1764 = vmatmul.mubr.bf16.gmra.mrb[92].mxu1 %v1512_v41  ;;  %v1470_v17 = vmax.f32 %v1372_v10, 0.0 }
 0x35e   :  { %v1378_v16 = vadd.f32 %v1377_v15, %v2690_v44  ;;  %v1471_v19 = vmax.f32 %v1374_v12, 0.0 }
 0x35f   :  { %v1472_v18 = vmax.f32 %v1376_v14, 0.0 }
 0x360   :  { %v1473_v20 = vmax.f32 %v1378_v16, 0.0 }
 0x361   :  { %v1514_v21 = vpack.c.bf16 %v1472_v18, %v1470_v17 }
 0x362   :  { %v1515_v22 = vpack.c.bf16 %v1473_v20, %v1471_v19  ;;  %v1381_v23 = vpop.f32.mrb[108].mxu0 }
 0x363   :  { %v1382_v24 = vadd.f32 %v1381_v23, %v2687_v58  ;;  %v1383_v25 = vpop.f32.mrb[109].mxu0 }
 0x364   :  { %v1384_v26 = vadd.f32 %v1383_v25, %v2690_v44  ;;  %v1385_v27 = vpop.f32.mrb[110].mxu0  ;;  %1771 = vmatprep.mubr.bf16.mxu1 %v1515_v22 }
 0x365   :  { %v1386_v28 = vadd.f32 %v1385_v27, %v2687_v58  ;;  %v1387_v29 = vpop.f32.mrb[111].mxu0  ;;  %1772 = vmatmul.mubr.bf16.gmra.mrb[96].mxu1 %v1514_v21  ;;  %v1474_v31 = vmax.f32 %v1382_v24, 0.0 }
 0x366   :  { %v1388_v30 = vadd.f32 %v1387_v29, %v2690_v44  ;;  %v1475_v33 = vmax.f32 %v1384_v26, 0.0 }
 0x367   :  { %v1476_v32 = vmax.f32 %v1386_v28, 0.0 }
 0x368   :  { %v1477_v34 = vmax.f32 %v1388_v30, 0.0 }
 0x369   :  { %v1516_v35 = vpack.c.bf16 %v1476_v32, %v1474_v31  ;;  %v2759_v32 = vld [vmem:[%s2813_s5 + $0x3] ss:$0 sm:$0xff]  ;;  %s2395_s5 = smov [#allocation11]  }
 0x36a   :  { %v1517_v36 = vpack.c.bf16 %v1477_v34, %v1475_v33  ;;  %v1391_v37 = vpop.f32.mrb[112].mxu0  ;;  %s1857_s18 = sshll.u32 %s2395_s5, 4  ;;  %s1858_s18 = int_to_ptr.vmem [resolvable:$true] %s1857_s18 }
 0x36b   :  { %v1392_v38 = vadd.f32 %v1391_v37, %v2687_v58  ;;  %v1393_v39 = vpop.f32.mrb[113].mxu0  ;;  %s2355_s19 = scalar_lea.vmem %s1858_s18, 4096  ;;  %p2360_p13 = scmp.lt.s32.totalorder %s1858_s18, %s1858_s18 }
 0x36c   :  { %v1394_v0 = vadd.f32 %v1393_v39, %v2690_v44  ;;  %v1395_v42 = vpop.f32.mrb[114].mxu0  ;;  %1779 = vmatprep.mubr.bf16.mxu1 %v1517_v36  ;;  %p2356_p12 = scmp.ne.s32.totalorder %s1858_s18, %s2355_s19  ;;  %p2361_p0 = scmp.lt.s32.totalorder %s2355_s19, %s2355_s19 }
 0x36d   :  { %v1396_v43 = vadd.f32 %v1395_v42, %v2687_v58  ;;  %v1397_v46 = vpop.f32.mrb[115].mxu0  ;;  %1780 = vmatmul.mubr.bf16.gmra.mrb[100].mxu1 %v1516_v35  ;;  %v1478_v48 = vmax.f32 %v1392_v38, 0.0 }
 0x36e   :  { %v1398_v47 = vadd.f32 %v1397_v46, %v2690_v44  ;;  %v1479_v50 = vmax.f32 %v1394_v0, 0.0  ;;  %p2362_p1 = por %p2361_p0, %p2360_p13 }
 0x36f   :  { %v1480_v49 = vmax.f32 %v1396_v43, 0.0 }
 0x370   :  { %v1481_v51 = vmax.f32 %v1398_v47, 0.0  ;;  %p2363_p2 = pnand %p2362_p1, %p2356_p12 }
 0x371   :  { %v1518_v52 = vpack.c.bf16 %v1480_v49, %v1478_v48 }
 0x372   :  { %v1519_v53 = vpack.c.bf16 %v1481_v51, %v1479_v50  ;;  %v1401_v54 = vpop.f32.mrb[116].mxu0 }
 0x373   :  { %v1402_v55 = vadd.f32 %v1401_v54, %v2687_v58  ;;  %v1403_v56 = vpop.f32.mrb[117].mxu0 }
 0x374   :  { %v1404_v57 = vadd.f32 %v1403_v56, %v2690_v44  ;;  %v1405_v59 = vpop.f32.mrb[118].mxu0  ;;  %1787 = vmatprep.mubr.bf16.mxu1 %v1519_v53 }
 0x375   :  { %v1406_v45 = vadd.f32 %v1405_v59, %v2687_v58  ;;  %v1407_v60 = vpop.f32.mrb[119].mxu0  ;;  %1788 = vmatmul.mubr.bf16.gmra.mrb[104].mxu1 %v1518_v52  ;;  %v1482_v62 = vmax.f32 %v1402_v55, 0.0 }
 0x376   :  { %v1408_v61 = vadd.f32 %v1407_v60, %v2690_v44  ;;  %v1483_v1 = vmax.f32 %v1404_v57, 0.0 }
 0x377   :  { %v1484_v63 = vmax.f32 %v1406_v45, 0.0 }
 0x378   :  { %v1485_v2 = vmax.f32 %v1408_v61, 0.0 }
 0x379   :  { %v1520_v3 = vpack.c.bf16 %v1484_v63, %v1482_v62 }
 0x37a   :  { %v1521_v4 = vpack.c.bf16 %v1485_v2, %v1483_v1  ;;  %v1411_v5 = vpop.f32.mrb[120].mxu0 }
 0x37b   :  { %v1412_v40 = vadd.f32 %v1411_v5, %v2687_v58  ;;  %v1413_v6 = vpop.f32.mrb[121].mxu0 }
 0x37c   :  { %v1414_v7 = vadd.f32 %v1413_v6, %v2690_v44  ;;  %v1415_v41 = vpop.f32.mrb[122].mxu0  ;;  %1795 = vmatprep.mubr.bf16.mxu1 %v1521_v4 }
 0x37d   :  { %v1416_v8 = vadd.f32 %v1415_v41, %v2687_v58  ;;  %v1417_v9 = vpop.f32.mrb[123].mxu0  ;;  %1796 = vmatmul.mubr.bf16.gmra.mrb[108].mxu1 %v1520_v3  ;;  %v1486_v11 = vmax.f32 %v1412_v40, 0.0 }
 0x37e   :  { %v1418_v10 = vadd.f32 %v1417_v9, %v2690_v44  ;;  %v1487_v13 = vmax.f32 %v1414_v7, 0.0 }
 0x37f   :  { %v1488_v12 = vmax.f32 %v1416_v8, 0.0 }
 0x380   :  { %v1489_v14 = vmax.f32 %v1418_v10, 0.0 }
 0x381   :  { %v1522_v15 = vpack.c.bf16 %v1488_v12, %v1486_v11 }
 0x382   :  { %v1523_v16 = vpack.c.bf16 %v1489_v14, %v1487_v13  ;;  %v1421_v17 = vpop.f32.mrb[124].mxu0 }
 0x383   :  { %v1422_v18 = vadd.f32 %v1421_v17, %v2687_v58  ;;  %v1423_v19 = vpop.f32.mrb[125].mxu0 }
 0x384   :  { %v1424_v20 = vadd.f32 %v1423_v19, %v2690_v44  ;;  %v1425_v21 = vpop.f32.mrb[126].mxu0  ;;  %1803 = vmatprep.mubr.bf16.mxu1 %v1523_v16 }
 0x385   :  { %v1426_v22 = vadd.f32 %v1425_v21, %v2687_v58  ;;  %v1427_v23 = vpop.f32.mrb[127].mxu0  ;;  %1804 = vmatmul.mubr.bf16.gmra.mrb[112].mxu1 %v1522_v15  ;;  %v1490_v25 = vmax.f32 %v1422_v18, 0.0 }
 0x386   :  { %v1428_v24 = vadd.f32 %v1427_v23, %v2690_v44  ;;  %v1491_v27 = vmax.f32 %v1424_v20, 0.0 }
 0x387   :  { %v1492_v26 = vmax.f32 %v1426_v22, 0.0 }
 0x388   :  { %v1493_v28 = vmax.f32 %v1428_v24, 0.0 }
 0x389   :  { %v1524_v29 = vpack.c.bf16 %v1492_v26, %v1490_v25 }
 0x38a   :  { %v1525_v30 = vpack.c.bf16 %v1493_v28, %v1491_v27 }
 0x38c   :  { %1811 = vmatprep.mubr.bf16.mxu1 %v1525_v30 }
 0x38d   :  { %1812 = vmatmul.mubr.bf16.gmra.mrb[116].mxu1 %v1524_v29 }
 0x3e8   :  { %v1986_v31 = vpop.f32.mrb[128].mxu0 }
 0x3e9   :  { %v1987_v33 = vpop.f32.mrb[129].mxu0 }
 0x3ea   :  { %v1988_v58 = vadd.f32 %v1987_v33, %v1986_v31  ;;  %v1989_v34 = vpop.f32.mrb[130].mxu0 }
 0x3eb   :  { %v1990_v35 = vpop.f32.mrb[131].mxu0 }
 0x3ec   :  { %v1694_v44 = vadd.f32 %v1988_v58, %v2759_v32  ;;  %v1991_v36 = vadd.f32 %v1990_v35, %v1989_v34 }
 0x3ee   :  { %1820 = vst [vmem:[#allocation11] sm:$0xff] %v1694_v44  ;;  %v1697_v37 = vadd.f32 %v1991_v36, %v2759_v32 }
 0x3f0   :  { %1821 = vst [vmem:[#allocation11 + $0x8] sm:$0xff] %v1697_v37  ;;  %v1992_v38 = vpop.f32.mrb[132].mxu0 }
 0x3f1   :  { %v1993_v39 = vpop.f32.mrb[133].mxu0 }
 0x3f2   :  { %v1994_v0 = vadd.f32 %v1993_v39, %v1992_v38  ;;  %v1995_v42 = vpop.f32.mrb[134].mxu0 }
 0x3f3   :  { %v1996_v43 = vpop.f32.mrb[135].mxu0 }
 0x3f4   :  { %v1702_v46 = vadd.f32 %v1994_v0, %v2759_v32  ;;  %v1997_v47 = vadd.f32 %v1996_v43, %v1995_v42 }
 0x3f6   :  { %1822 = vst [vmem:[#allocation11 + $0x10] sm:$0xff] %v1702_v46  ;;  %v1705_v48 = vadd.f32 %v1997_v47, %v2759_v32 }
 0x3f8   :  { %1823 = vst [vmem:[#allocation11 + $0x18] sm:$0xff] %v1705_v48  ;;  %v1998_v49 = vpop.f32.mrb[64].mxu1 }
 0x3f9   :  { %v1999_v50 = vpop.f32.mrb[65].mxu1 }
 0x3fa   :  { %v2000_v51 = vadd.f32 %v1999_v50, %v1998_v49  ;;  %v2001_v52 = vpop.f32.mrb[66].mxu1 }
 0x3fb   :  { %v2002_v53 = vpop.f32.mrb[67].mxu1 }
 0x3fc   :  { %v1710_v54 = vadd.f32 %v2000_v51, %v2759_v32  ;;  %v2003_v55 = vadd.f32 %v2002_v53, %v2001_v52 }
 0x3fe   :  { %1824 = vst [vmem:[#allocation11 + $0x20] sm:$0xff] %v1710_v54  ;;  %v1713_v56 = vadd.f32 %v2003_v55, %v2759_v32 }
 0x400   :  { %1825 = vst [vmem:[#allocation11 + $0x28] sm:$0xff] %v1713_v56  ;;  %v2004_v57 = vpop.f32.mrb[68].mxu1 }
 0x401   :  { %v2005_v59 = vpop.f32.mrb[69].mxu1 }
 0x402   :  { %v2006_v45 = vadd.f32 %v2005_v59, %v2004_v57  ;;  %v2007_v60 = vpop.f32.mrb[70].mxu1 }
 0x403   :  { %v2008_v61 = vpop.f32.mrb[71].mxu1 }
 0x404   :  { %v1718_v62 = vadd.f32 %v2006_v45, %v2759_v32  ;;  %v2009_v63 = vadd.f32 %v2008_v61, %v2007_v60 }
 0x406   :  { %1826 = vst [vmem:[#allocation11 + $0x30] sm:$0xff] %v1718_v62  ;;  %v1721_v1 = vadd.f32 %v2009_v63, %v2759_v32 }
 0x408   :  { %1827 = vst [vmem:[#allocation11 + $0x38] sm:$0xff] %v1721_v1  ;;  %v2010_v2 = vpop.f32.mrb[72].mxu1 }
 0x409   :  { %v2011_v3 = vpop.f32.mrb[73].mxu1 }
 0x40a   :  { %v2012_v4 = vadd.f32 %v2011_v3, %v2010_v2  ;;  %v2013_v5 = vpop.f32.mrb[74].mxu1 }
 0x40b   :  { %v2014_v40 = vpop.f32.mrb[75].mxu1 }
 0x40c   :  { %v1726_v6 = vadd.f32 %v2012_v4, %v2759_v32  ;;  %v2015_v7 = vadd.f32 %v2014_v40, %v2013_v5 }
 0x40e   :  { %1828 = vst [vmem:[#allocation11 + $0x40] sm:$0xff] %v1726_v6  ;;  %v1729_v41 = vadd.f32 %v2015_v7, %v2759_v32 }
 0x410   :  { %1829 = vst [vmem:[#allocation11 + $0x48] sm:$0xff] %v1729_v41  ;;  %v2016_v8 = vpop.f32.mrb[76].mxu1 }
 0x411   :  { %v2017_v9 = vpop.f32.mrb[77].mxu1 }
 0x412   :  { %v2018_v10 = vadd.f32 %v2017_v9, %v2016_v8  ;;  %v2019_v11 = vpop.f32.mrb[78].mxu1 }
 0x413   :  { %v2020_v12 = vpop.f32.mrb[79].mxu1 }
 0x414   :  { %v1734_v13 = vadd.f32 %v2018_v10, %v2759_v32  ;;  %v2021_v14 = vadd.f32 %v2020_v12, %v2019_v11 }
 0x416   :  { %1830 = vst [vmem:[#allocation11 + $0x50] sm:$0xff] %v1734_v13  ;;  %v1737_v15 = vadd.f32 %v2021_v14, %v2759_v32 }
 0x418   :  { %1831 = vst [vmem:[#allocation11 + $0x58] sm:$0xff] %v1737_v15  ;;  %v2022_v16 = vpop.f32.mrb[80].mxu1 }
 0x419   :  { %v2023_v17 = vpop.f32.mrb[81].mxu1 }
 0x41a   :  { %v2024_v18 = vadd.f32 %v2023_v17, %v2022_v16  ;;  %v2025_v19 = vpop.f32.mrb[82].mxu1 }
 0x41b   :  { %v2026_v20 = vpop.f32.mrb[83].mxu1 }
 0x41c   :  { %v1742_v21 = vadd.f32 %v2024_v18, %v2759_v32  ;;  %v2027_v22 = vadd.f32 %v2026_v20, %v2025_v19 }
 0x41e   :  { %1832 = vst [vmem:[#allocation11 + $0x60] sm:$0xff] %v1742_v21  ;;  %v1745_v23 = vadd.f32 %v2027_v22, %v2759_v32 }
 0x420   :  { %1833 = vst [vmem:[#allocation11 + $0x68] sm:$0xff] %v1745_v23  ;;  %v2028_v24 = vpop.f32.mrb[84].mxu1 }
 0x421   :  { %v2029_v25 = vpop.f32.mrb[85].mxu1 }
 0x422   :  { %v2030_v26 = vadd.f32 %v2029_v25, %v2028_v24  ;;  %v2031_v27 = vpop.f32.mrb[86].mxu1 }
 0x423   :  { %v2032_v28 = vpop.f32.mrb[87].mxu1 }
 0x424   :  { %v1750_v29 = vadd.f32 %v2030_v26, %v2759_v32  ;;  %v2033_v30 = vadd.f32 %v2032_v28, %v2031_v27 }
 0x426   :  { %1834 = vst [vmem:[#allocation11 + $0x70] sm:$0xff] %v1750_v29  ;;  %v1753_v31 = vadd.f32 %v2033_v30, %v2759_v32 }
 0x428   :  { %1835 = vst [vmem:[#allocation11 + $0x78] sm:$0xff] %v1753_v31  ;;  %v2034_v33 = vpop.f32.mrb[88].mxu1 }
 0x429   :  { %v2035_v58 = vpop.f32.mrb[89].mxu1 }
 0x42a   :  { %v2036_v34 = vadd.f32 %v2035_v58, %v2034_v33  ;;  %v2037_v35 = vpop.f32.mrb[90].mxu1 }
 0x42b   :  { %v2038_v44 = vpop.f32.mrb[91].mxu1 }
 0x42c   :  { %v1758_v36 = vadd.f32 %v2036_v34, %v2759_v32  ;;  %v2039_v37 = vadd.f32 %v2038_v44, %v2037_v35 }
 0x42e   :  { %1836 = vst [vmem:[#allocation11 + $0x80] sm:$0xff] %v1758_v36  ;;  %v1761_v38 = vadd.f32 %v2039_v37, %v2759_v32 }
 0x430   :  { %1837 = vst [vmem:[#allocation11 + $0x88] sm:$0xff] %v1761_v38  ;;  %v2040_v39 = vpop.f32.mrb[92].mxu1 }
 0x431   :  { %v2041_v0 = vpop.f32.mrb[93].mxu1 }
 0x432   :  { %v2042_v42 = vadd.f32 %v2041_v0, %v2040_v39  ;;  %v2043_v43 = vpop.f32.mrb[94].mxu1 }
 0x433   :  { %v2044_v46 = vpop.f32.mrb[95].mxu1 }
 0x434   :  { %v1766_v47 = vadd.f32 %v2042_v42, %v2759_v32  ;;  %v2045_v48 = vadd.f32 %v2044_v46, %v2043_v43 }
 0x436   :  { %1838 = vst [vmem:[#allocation11 + $0x90] sm:$0xff] %v1766_v47  ;;  %v1769_v49 = vadd.f32 %v2045_v48, %v2759_v32 }
 0x438   :  { %1839 = vst [vmem:[#allocation11 + $0x98] sm:$0xff] %v1769_v49  ;;  %v2046_v50 = vpop.f32.mrb[96].mxu1 }
 0x439   :  { %v2047_v51 = vpop.f32.mrb[97].mxu1 }
 0x43a   :  { %v2048_v52 = vadd.f32 %v2047_v51, %v2046_v50  ;;  %v2049_v53 = vpop.f32.mrb[98].mxu1 }
 0x43b   :  { %v2050_v54 = vpop.f32.mrb[99].mxu1 }
 0x43c   :  { %v1774_v55 = vadd.f32 %v2048_v52, %v2759_v32  ;;  %v2051_v56 = vadd.f32 %v2050_v54, %v2049_v53 }
 0x43e   :  { %1840 = vst [vmem:[#allocation11 + $0xa0] sm:$0xff] %v1774_v55  ;;  %v1777_v57 = vadd.f32 %v2051_v56, %v2759_v32 }
 0x440   :  { %1841 = vst [vmem:[#allocation11 + $0xa8] sm:$0xff] %v1777_v57  ;;  %v2052_v59 = vpop.f32.mrb[100].mxu1 }
 0x441   :  { %v2053_v45 = vpop.f32.mrb[101].mxu1 }
 0x442   :  { %v2054_v60 = vadd.f32 %v2053_v45, %v2052_v59  ;;  %v2055_v61 = vpop.f32.mrb[102].mxu1 }
 0x443   :  { %v2056_v62 = vpop.f32.mrb[103].mxu1 }
 0x444   :  { %v1782_v63 = vadd.f32 %v2054_v60, %v2759_v32  ;;  %v2057_v1 = vadd.f32 %v2056_v62, %v2055_v61 }
 0x446   :  { %1842 = vst [vmem:[#allocation11 + $0xb0] sm:$0xff] %v1782_v63  ;;  %v1785_v2 = vadd.f32 %v2057_v1, %v2759_v32 }
 0x448   :  { %1843 = vst [vmem:[#allocation11 + $0xb8] sm:$0xff] %v1785_v2  ;;  %v2058_v3 = vpop.f32.mrb[104].mxu1 }
 0x449   :  { %v2059_v4 = vpop.f32.mrb[105].mxu1 }
 0x44a   :  { %v2060_v5 = vadd.f32 %v2059_v4, %v2058_v3  ;;  %v2061_v40 = vpop.f32.mrb[106].mxu1 }
 0x44b   :  { %v2062_v6 = vpop.f32.mrb[107].mxu1 }
 0x44c   :  { %v1790_v7 = vadd.f32 %v2060_v5, %v2759_v32  ;;  %v2063_v41 = vadd.f32 %v2062_v6, %v2061_v40 }
 0x44e   :  { %1844 = vst [vmem:[#allocation11 + $0xc0] sm:$0xff] %v1790_v7  ;;  %v1793_v8 = vadd.f32 %v2063_v41, %v2759_v32 }
 0x450   :  { %1845 = vst [vmem:[#allocation11 + $0xc8] sm:$0xff] %v1793_v8  ;;  %v2064_v9 = vpop.f32.mrb[108].mxu1 }
 0x451   :  { %v2065_v10 = vpop.f32.mrb[109].mxu1 }
 0x452   :  { %v2066_v11 = vadd.f32 %v2065_v10, %v2064_v9  ;;  %v2067_v12 = vpop.f32.mrb[110].mxu1 }
 0x453   :  { %v2068_v13 = vpop.f32.mrb[111].mxu1 }
 0x454   :  { %v1798_v14 = vadd.f32 %v2066_v11, %v2759_v32  ;;  %v2069_v15 = vadd.f32 %v2068_v13, %v2067_v12 }
 0x456   :  { %1846 = vst [vmem:[#allocation11 + $0xd0] sm:$0xff] %v1798_v14  ;;  %v1801_v16 = vadd.f32 %v2069_v15, %v2759_v32 }
 0x458   :  { %1847 = vst [vmem:[#allocation11 + $0xd8] sm:$0xff] %v1801_v16  ;;  %v2070_v17 = vpop.f32.mrb[112].mxu1 }
 0x459   :  { %v2071_v18 = vpop.f32.mrb[113].mxu1 }
 0x45a   :  { %v2072_v19 = vadd.f32 %v2071_v18, %v2070_v17  ;;  %v2073_v20 = vpop.f32.mrb[114].mxu1 }
 0x45b   :  { %v2074_v21 = vpop.f32.mrb[115].mxu1 }
 0x45c   :  { %v1806_v22 = vadd.f32 %v2072_v19, %v2759_v32  ;;  %v2075_v23 = vadd.f32 %v2074_v21, %v2073_v20 }
 0x45e   :  { %1848 = vst [vmem:[#allocation11 + $0xe0] sm:$0xff] %v1806_v22  ;;  %v1809_v24 = vadd.f32 %v2075_v23, %v2759_v32 }
 0x460   :  { %1849 = vst [vmem:[#allocation11 + $0xe8] sm:$0xff] %v1809_v24  ;;  %v2076_v25 = vpop.f32.mrb[116].mxu1 }
 0x461   :  { %v2077_v26 = vpop.f32.mrb[117].mxu1 }
 0x462   :  { %v2078_v27 = vadd.f32 %v2077_v26, %v2076_v25  ;;  %v2079_v28 = vpop.f32.mrb[118].mxu1 }
 0x463   :  { %v2080_v29 = vpop.f32.mrb[119].mxu1 }
 0x464   :  { %v1814_v30 = vadd.f32 %v2078_v27, %v2759_v32  ;;  %v2081_v31 = vadd.f32 %v2080_v29, %v2079_v28 }
 0x466   :  { %1850 = vst [vmem:[#allocation11 + $0xf0] sm:$0xff] %v1814_v30  ;;  %v1817_v33 = vadd.f32 %v2081_v31, %v2759_v32 }
 0x468   :  { %1851 = vst [vmem:[#allocation11 + $0xf8] sm:$0xff] %v1817_v33 }
 0x469   :  { %2366 = shalt.err (!%p2363_p2)
}
 0x46a   :  { %s2367_s1 = scalar_lea.hbm %s2814_s6, 4096 }
 0x46b   :  { %p2368_p3 = scmp.ne.s32.totalorder %s2814_s6, %s2367_s1  ;;  %p2371_p4 = scmp.lt.u32.totalorder %s2367_s1, %s2814_s6 }
 0x46d   :  { %p2373_p5 = pnand %p2371_p4, %p2368_p3 }
 0x46f   :  { %2376 = shalt.err (!%p2373_p5)
}
 0x470   :  { %1863 = dma.vmem_to_hbm [thread:$0]  %s1858_s18, 4096, %s2814_s6, [#allocation4], %s2387_s9, %s2387_s9, %s2388_s10  }
 0x471   :  { %2383 = dma.done.wait [#allocation4], 4096  }
 0x472   :  { %2384 = vsyncadd [#allocation4], 4294963200 }
 0x473   :  { %1867 = vsyncpa [#allocation3], 1 }
 0x474   :  { %1868 = vsyncpa [#allocation6], 1 }
 0x475   :  { %1869 = vsyncpa [#allocation9], 1 }
 0x476   :  { %1870 = vsyncpa [#allocation4], 1 }

</bundles_post_ra>
